<compile_context>
chip_gen: v6e
topology: v6e:2x2x1
jax: 0.10.0
libtpu: 0.0.40
codegen_flags: <defaults>
</compile_context>

<pallas_src>
import functools

import jax
import jax.numpy as jnp
from jax import lax
from jax.experimental import pallas as pl
from jax.experimental.pallas import tpu as pltpu


def _round_up(x, m):
    return (x + m - 1) // m * m


# ----------------------------------------------------------------------------
# Pallas GEMM kernels: leaky_relu(patches @ (W*bn_scale) + bn_bias, 0.2)
# ----------------------------------------------------------------------------
def _gemm_bias_lrelu_single_k_kernel(p_ref, w_ref, b_ref, o_ref):
    # Full-K block: one MXU pass per (i, j) tile, bias + leaky_relu fused.
    y = jnp.dot(p_ref[...], w_ref[...], preferred_element_type=jnp.float32)
    y = y + b_ref[...]
    o_ref[...] = jnp.where(y >= 0.0, y, 0.2 * y).astype(o_ref.dtype)


def _gemm_bias_lrelu_multi_k_kernel(p_ref, w_ref, b_ref, o_ref, acc_ref):
    # Fallback for very large K: f32 accumulator resident across the K axis.
    @pl.when(pl.program_id(2) == 0)
    def _():
        # Bias folded into the accumulator init (saves the epilogue VPU add).
        acc_ref[...] = jnp.broadcast_to(b_ref[...], acc_ref.shape)

    acc_ref[...] += jnp.dot(
        p_ref[...], w_ref[...], preferred_element_type=jnp.float32
    )

    @pl.when(pl.program_id(2) == pl.num_programs(2) - 1)
    def _():
        y = acc_ref[...]
        o_ref[...] = jnp.where(y >= 0.0, y, 0.2 * y).astype(o_ref.dtype)


def _gemm_bias_lrelu(patches, w, bias, out_dtype):
    """leaky_relu(patches @ w + bias, 0.2), f32 accumulation, `out_dtype` out."""
    M, K = patches.shape
    OC = w.shape[1]

    # --- tile / padding selection -------------------------------------------
    M_pad = _round_up(M, 128)
    OC_pad = _round_up(OC, 128)

    # Full-K block: no zero-padded K grid steps (K only rounded to a 16-multiple
    # for bf16 sublane packing).  Split K only for very large K (not hit here).
    K_pad = _round_up(K, 16)
    tk = K_pad
    if K_pad > 2048:
        tk = 1024
        K_pad = _round_up(K, tk)

    # Lane-dense output tile: largest of 512/384/256/128 that divides OC_pad.
    tn = 128
    for cand in (512, 384, 256, 128):
        if OC_pad % cand == 0:
            tn = cand
            break

    tm = 512 if M_pad % 512 == 0 else (256 if M_pad % 256 == 0 else 128)
    # Keep >= 2 blocks on the parallel (M, OC) grid so megacore sharding
    # (v7x's two TensorCores) still has work to split.
    while (M_pad // tm) * (OC_pad // tn) < 2 and tm > 64:
        tm //= 2

    # --- operand prep: single bf16, tile-padded materialization each --------
    patches = jnp.pad(patches.astype(jnp.bfloat16),
                      ((0, M_pad - M), (0, K_pad - K)))
    w = jnp.pad(w, ((0, K_pad - K), (0, OC_pad - OC))).astype(jnp.bfloat16)
    bias = jnp.pad(bias, ((0, OC_pad - OC),)).reshape(1, OC_pad).astype(jnp.float32)

    out_bytes = jnp.dtype(out_dtype).itemsize
    cost = pl.CostEstimate(
        flops=2 * M_pad * K_pad * OC_pad,
        transcendentals=0,
        bytes_accessed=(M_pad * K_pad * 2 + K_pad * OC_pad * 2
                        + OC_pad * 4 + M_pad * OC_pad * out_bytes),
    )

    # Right-sized VMEM limit: double-buffered operands + acc + headroom.
    vmem_need = (2 * (tm * tk * 2 + tk * tn * 2 + tn * 4 + tm * tn * out_bytes)
                 + tm * tn * 4)
    vmem_limit = int(min(max(2 * vmem_need + (4 << 20), 16 << 20), 64 << 20))

    n_k = K_pad // tk
    if n_k == 1:
        grid = (M_pad // tm, OC_pad // tn)
        kernel = _gemm_bias_lrelu_single_k_kernel
        in_specs = [
            pl.BlockSpec((tm, tk), lambda i, j: (i, 0)),
            pl.BlockSpec((tk, tn), lambda i, j: (0, j)),
            pl.BlockSpec((1, tn), lambda i, j: (0, j)),
        ]
        out_spec = pl.BlockSpec((tm, tn), lambda i, j: (i, j))
        scratch = []
        semantics = ("parallel", "parallel")
    else:
        grid = (M_pad // tm, OC_pad // tn, n_k)
        kernel = _gemm_bias_lrelu_multi_k_kernel
        in_specs = [
            pl.BlockSpec((tm, tk), lambda i, j, k: (i, k)),
            pl.BlockSpec((tk, tn), lambda i, j, k: (k, j)),
            pl.BlockSpec((1, tn), lambda i, j, k: (0, j)),
        ]
        out_spec = pl.BlockSpec((tm, tn), lambda i, j, k: (i, j))
        scratch = [pltpu.VMEM((tm, tn), jnp.float32)]
        semantics = ("parallel", "parallel", "arbitrary")

    out = pl.pallas_call(
        kernel,
        out_shape=jax.ShapeDtypeStruct((M_pad, OC_pad), out_dtype),
        grid_spec=pltpu.PrefetchScalarGridSpec(
            num_scalar_prefetch=0,
            grid=grid,
            in_specs=in_specs,
            out_specs=out_spec,
            scratch_shapes=scratch,
        ),
        compiler_params=pltpu.CompilerParams(
            dimension_semantics=semantics,
            vmem_limit_bytes=vmem_limit,
        ),
        cost_estimate=cost,
    )(patches, w, bias)

    if M_pad == M and OC_pad == OC:
        return out
    return out[:M, :OC]


# ----------------------------------------------------------------------------
# Glue: im2col (bf16, single materialization) + BasicConv2d
# ----------------------------------------------------------------------------
def _im2col(x_nhwc, kh, kw, stride, padding):
    """bf16 im2col patches [N*oh*ow, kh*kw*C] built from strided slices."""
    if padding > 0:
        x_nhwc = jnp.pad(
            x_nhwc, ((0, 0), (padding, padding), (padding, padding), (0, 0))
        )
    N, H, W, C = x_nhwc.shape
    oh = (H - kh) // stride + 1
    ow = (W - kw) // stride + 1
    if kh == 1 and kw == 1 and stride == 1:
        # 1x1 conv: im2col is just a reshape.
        return x_nhwc.reshape(N * oh * ow, C), oh, ow
    # TODO(synk): stream these taps as a grid axis instead of materializing
    #             the duplicated patch matrix in HBM.
    taps = []
    for dy in range(kh):
        for dx in range(kw):
            sl = lax.slice(
                x_nhwc,
                (0, dy, dx, 0),
                (N, dy + (oh - 1) * stride + 1, dx + (ow - 1) * stride + 1, C),
                (1, stride, stride, 1),
            )
            taps.append(sl)  # [N, oh, ow, C]
    patches = jnp.stack(taps, axis=3)  # [N, oh, ow, kh*kw, C]
    return patches.reshape(N * oh * ow, kh * kw * C), oh, ow


def basic_conv2d(x_nhwc, params, *, stride, padding, out_dtype=jnp.bfloat16):
    """conv(bias=False) + BatchNorm2d(eps=1e-3, eval) + leaky_relu(0.2)."""
    w, gamma, beta, mean, var = params  # w: [KH, KW, IC, OC]
    kh, kw, ic, oc = w.shape
    x_nhwc = x_nhwc.astype(jnp.bfloat16)
    patches, oh, ow = _im2col(x_nhwc, kh, kw, stride, padding)
    inv_std = lax.rsqrt(var + 1e-3)
    scale = gamma * inv_std                     # [OC]
    bias = beta - mean * scale                  # [OC]
    # Fold BN scale into the weights: (P @ W) * s + b == P @ (W * s) + b.
    w2d = w.reshape(kh * kw * ic, oc) * scale[None, :]
    out = _gemm_bias_lrelu(patches, w2d, bias, out_dtype)
    N = x_nhwc.shape[0]
    return out.reshape(N, oh, ow, oc)


# ----------------------------------------------------------------------------
# Max-pool branch (3x3, stride 2, no padding)
# ----------------------------------------------------------------------------
def _maxpool_3x3_s2(x_nhwc):
    # Single fused pass over x (reads x once, writes the pooled output once);
    # replaces the previous 9x-stacked, untiled Pallas max kernel.
    # TODO(synk): fused Pallas pool (M-tiled, taps looped in-kernel over a
    #             parity/space-to-depth split of the input).
    return lax.reduce_window(
        x_nhwc,
        jnp.array(-jnp.inf, dtype=x_nhwc.dtype),
        lax.max,
        window_dimensions=(1, 3, 3, 1),
        window_strides=(1, 2, 2, 1),
        padding="VALID",
    )


# ----------------------------------------------------------------------------
# Inception_Reduction_A forward
# ----------------------------------------------------------------------------
@functools.partial(jax.jit, static_argnames=())
def inception_reduction_a(x_nchw, params):
    x = jnp.transpose(x_nchw, (0, 2, 3, 1))      # NCHW -> NHWC
    x_bf16 = x.astype(jnp.bfloat16)              # conv branches run in bf16

    # Final branch outputs in f32 (module output dtype); intermediates bf16.
    branch3x3 = basic_conv2d(x_bf16, params["branch3x3"], stride=2, padding=0,
                             out_dtype=jnp.float32)

    dbl = basic_conv2d(x_bf16, params["branch3x3dbl_1"], stride=1, padding=0,
                       out_dtype=jnp.bfloat16)
    dbl = basic_conv2d(dbl, params["branch3x3dbl_2"], stride=1, padding=1,
                       out_dtype=jnp.bfloat16)
    dbl = basic_conv2d(dbl, params["branch3x3dbl_3"], stride=2, padding=0,
                       out_dtype=jnp.float32)

    branch_pool = _maxpool_3x3_s2(x)

    # TODO(synk): write branches directly into channel-offset slices of one
    #             lane-padded output buffer instead of concatenating.
    out = jnp.concatenate([branch3x3, dbl, branch_pool], axis=-1)
    return jnp.transpose(out, (0, 3, 1, 2))      # NHWC -> NCHW


# ----------------------------------------------------------------------------
# Deterministic parameter init (shapes from the PyTorch __init__, scale_factor=1)
# ----------------------------------------------------------------------------
def _make_conv_params(key, kh, kw, ic, oc):
    k1, k2, k3, k4, k5 = jax.random.split(key, 5)
    w = 0.05 * jax.random.normal(k1, (kh, kw, ic, oc), jnp.float32)
    gamma = 1.0 + 0.1 * jax.random.normal(k2, (oc,), jnp.float32)
    beta = 0.1 * jax.random.normal(k3, (oc,), jnp.float32)
    mean = 0.1 * jax.random.normal(k4, (oc,), jnp.float32)
    var = 0.9 + 0.1 * jnp.abs(jax.random.normal(k5, (oc,), jnp.float32))
    return (w, gamma, beta, mean, var)


def make_params(key, in_channels):
    k1, k2, k3, k4 = jax.random.split(key, 4)
    return {
        "branch3x3": _make_conv_params(k1, 3, 3, in_channels, 384),
        "branch3x3dbl_1": _make_conv_params(k2, 1, 1, in_channels, 64),
        "branch3x3dbl_2": _make_conv_params(k3, 3, 3, 64, 96),
        "branch3x3dbl_3": _make_conv_params(k4, 3, 3, 96, 96),
    }


if __name__ == "__main__":
    key = jax.random.PRNGKey(0)
    kx, kp = jax.random.split(key)

    N, C, H, W = 2, 4, 16, 16
    x = jax.random.normal(kx, (N, C, H, W), jnp.float32)
    params = make_params(kp, C)

    y = inception_reduction_a(x, params)
    y = jax.block_until_ready(y)

    # Expected: (2, 384 + 96 + 4, 7, 7)
    assert y.shape == (N, 384 + 96 + C, (H - 3) // 2 + 1, (W - 3) // 2 + 1), y.shape
    assert jnp.all(jnp.isfinite(y))
    print("KERNEL_OK")
</pallas_src>

<mosaic_0001>
module attributes {stable_mosaic.version = 11 : i64} {
  func.func @_gemm_bias_lrelu_single_k_kernel(%arg0: i32, %arg1: i32, %arg2: memref<256x16xbf16, #tpu.memory_space<vmem>>, %arg3: memref<16x128xbf16, #tpu.memory_space<vmem>>, %arg4: memref<1x128xf32, #tpu.memory_space<vmem>>, %arg5: memref<256x128xbf16, #tpu.memory_space<vmem>>) attributes {dimension_semantics = [#tpu.dimension_semantics<parallel>, #tpu.dimension_semantics<parallel>], iteration_bounds = array<i64: 2, 1>, scalar_prefetch = 0 : i64, scratch_operands = 0 : i64, tpu.core_type = #tpu.core_type<tc>, window_params = [{transform_indices = @transform_0, window_bounds = array<i64: 256, 16>}, {transform_indices = @transform_1, window_bounds = array<i64: 16, 128>}, {transform_indices = @transform_2, window_bounds = array<i64: 1, 128>}, {transform_indices = @transform_3, window_bounds = array<i64: 256, 128>}]} {
    %c0 = arith.constant 0 : index
    %c0_0 = arith.constant 0 : index
    %0 = vector.load %arg2[%c0, %c0_0] : memref<256x16xbf16, #tpu.memory_space<vmem>>, vector<256x16xbf16>
    %c0_1 = arith.constant 0 : index
    %c0_2 = arith.constant 0 : index
    %1 = vector.load %arg3[%c0_1, %c0_2] : memref<16x128xbf16, #tpu.memory_space<vmem>>, vector<16x128xbf16>
    %cst = arith.constant dense<0.000000e+00> : vector<256x128xf32>
    %2 = tpu.matmul %0, %1, %cst {dimension_numbers = #tpu.dot_dimension_numbers<[1], [0], [0], [1], [0, 0, 1, 1], [], []>} : vector<256x16xbf16>, vector<16x128xbf16>, vector<256x128xf32> -> vector<256x128xf32>
    %c0_3 = arith.constant 0 : index
    %c0_4 = arith.constant 0 : index
    %3 = vector.load %arg4[%c0_3, %c0_4] : memref<1x128xf32, #tpu.memory_space<vmem>>, vector<1x128xf32>
    %4 = vector.broadcast %3 : vector<1x128xf32> to vector<256x128xf32>
    %5 = arith.addf %2, %4 : vector<256x128xf32>
    %cst_5 = arith.constant 0.000000e+00 : f32
    %6 = vector.broadcast %cst_5 : f32 to vector<256x128xf32>
    %7 = arith.cmpf oge, %5, %6 : vector<256x128xf32>
    %cst_6 = arith.constant 2.000000e-01 : f32
    %8 = vector.broadcast %cst_6 : f32 to vector<256x128xf32>
    %9 = arith.mulf %8, %5 : vector<256x128xf32>
    %10 = arith.select %7, %5, %9 : vector<256x128xi1>, vector<256x128xf32>
    %11 = arith.truncf %10 : vector<256x128xf32> to vector<256x128xbf16>
    %c0_7 = arith.constant 0 : index
    %c0_8 = arith.constant 0 : index
    %12 = vector.load %arg5[%c0_7, %c0_8] : memref<256x128xbf16, #tpu.memory_space<vmem>>, vector<256x128xbf16>
    tpu.vector_store %arg5[%c0_7, %c0_8], %11 {strides = array<i32>} : memref<256x128xbf16, #tpu.memory_space<vmem>>, vector<256x128xbf16>,
    return
  }
  func.func @transform_0(%arg0: i32, %arg1: i32) -> (i32, i32) {
    %c0_i32 = arith.constant 0 : i32
    %c0_i32_0 = arith.constant 0 : i32
    return %arg0, %c0_i32 : i32, i32
  }
  func.func @transform_1(%arg0: i32, %arg1: i32) -> (i32, i32) {
    %c0_i32 = arith.constant 0 : i32
    %c0_i32_0 = arith.constant 0 : i32
    return %c0_i32, %arg1 : i32, i32
  }
  func.func @transform_2(%arg0: i32, %arg1: i32) -> (i32, i32) {
    %c0_i32 = arith.constant 0 : i32
    %c0_i32_0 = arith.constant 0 : i32
    return %c0_i32, %arg1 : i32, i32
  }
  func.func @transform_3(%arg0: i32, %arg1: i32) -> (i32, i32) {
    %c0_i32 = arith.constant 0 : i32
    return %arg0, %arg1 : i32, i32
  }
}

module attributes {stable_mosaic.version = 11 : i64} {
  func.func @_gemm_bias_lrelu_single_k_kernel(%arg0: i32, %arg1: i32, %arg2: memref<256x576xbf16, #tpu.memory_space<vmem>>, %arg3: memref<576x128xbf16, #tpu.memory_space<vmem>>, %arg4: memref<1x128xf32, #tpu.memory_space<vmem>>, %arg5: memref<256x128xbf16, #tpu.memory_space<vmem>>) attributes {dimension_semantics = [#tpu.dimension_semantics<parallel>, #tpu.dimension_semantics<parallel>], iteration_bounds = array<i64: 2, 1>, scalar_prefetch = 0 : i64, scratch_operands = 0 : i64, tpu.core_type = #tpu.core_type<tc>, window_params = [{transform_indices = @transform_0, window_bounds = array<i64: 256, 576>}, {transform_indices = @transform_1, window_bounds = array<i64: 576, 128>}, {transform_indices = @transform_2, window_bounds = array<i64: 1, 128>}, {transform_indices = @transform_3, window_bounds = array<i64: 256, 128>}]} {
    %c0 = arith.constant 0 : index
    %c0_0 = arith.constant 0 : index
    %0 = vector.load %arg2[%c0, %c0_0] : memref<256x576xbf16, #tpu.memory_space<vmem>>, vector<256x576xbf16>
    %c0_1 = arith.constant 0 : index
    %c0_2 = arith.constant 0 : index
    %1 = vector.load %arg3[%c0_1, %c0_2] : memref<576x128xbf16, #tpu.memory_space<vmem>>, vector<576x128xbf16>
    %cst = arith.constant dense<0.000000e+00> : vector<256x128xf32>
    %2 = tpu.matmul %0, %1, %cst {dimension_numbers = #tpu.dot_dimension_numbers<[1], [0], [0], [1], [0, 0, 1, 1], [], []>} : vector<256x576xbf16>, vector<576x128xbf16>, vector<256x128xf32> -> vector<256x128xf32>
    %c0_3 = arith.constant 0 : index
    %c0_4 = arith.constant 0 : index
    %3 = vector.load %arg4[%c0_3, %c0_4] : memref<1x128xf32, #tpu.memory_space<vmem>>, vector<1x128xf32>
    %4 = vector.broadcast %3 : vector<1x128xf32> to vector<256x128xf32>
    %5 = arith.addf %2, %4 : vector<256x128xf32>
    %cst_5 = arith.constant 0.000000e+00 : f32
    %6 = vector.broadcast %cst_5 : f32 to vector<256x128xf32>
    %7 = arith.cmpf oge, %5, %6 : vector<256x128xf32>
    %cst_6 = arith.constant 2.000000e-01 : f32
    %8 = vector.broadcast %cst_6 : f32 to vector<256x128xf32>
    %9 = arith.mulf %8, %5 : vector<256x128xf32>
    %10 = arith.select %7, %5, %9 : vector<256x128xi1>, vector<256x128xf32>
    %11 = arith.truncf %10 : vector<256x128xf32> to vector<256x128xbf16>
    %c0_7 = arith.constant 0 : index
    %c0_8 = arith.constant 0 : index
    %12 = vector.load %arg5[%c0_7, %c0_8] : memref<256x128xbf16, #tpu.memory_space<vmem>>, vector<256x128xbf16>
    tpu.vector_store %arg5[%c0_7, %c0_8], %11 {strides = array<i32>} : memref<256x128xbf16, #tpu.memory_space<vmem>>, vector<256x128xbf16>,
    return
  }
  func.func @transform_0(%arg0: i32, %arg1: i32) -> (i32, i32) {
    %c0_i32 = arith.constant 0 : i32
    %c0_i32_0 = arith.constant 0 : i32
    return %arg0, %c0_i32 : i32, i32
  }
  func.func @transform_1(%arg0: i32, %arg1: i32) -> (i32, i32) {
    %c0_i32 = arith.constant 0 : i32
    %c0_i32_0 = arith.constant 0 : i32
    return %c0_i32, %arg1 : i32, i32
  }
  func.func @transform_2(%arg0: i32, %arg1: i32) -> (i32, i32) {
    %c0_i32 = arith.constant 0 : i32
    %c0_i32_0 = arith.constant 0 : i32
    return %c0_i32, %arg1 : i32, i32
  }
  func.func @transform_3(%arg0: i32, %arg1: i32) -> (i32, i32) {
    %c0_i32 = arith.constant 0 : i32
    return %arg0, %arg1 : i32, i32
  }
}

module attributes {stable_mosaic.version = 11 : i64} {
  func.func @_gemm_bias_lrelu_single_k_kernel(%arg0: i32, %arg1: i32, %arg2: memref<64x864xbf16, #tpu.memory_space<vmem>>, %arg3: memref<864x128xbf16, #tpu.memory_space<vmem>>, %arg4: memref<1x128xf32, #tpu.memory_space<vmem>>, %arg5: memref<64x128xf32, #tpu.memory_space<vmem>>) attributes {dimension_semantics = [#tpu.dimension_semantics<parallel>, #tpu.dimension_semantics<parallel>], iteration_bounds = array<i64: 2, 1>, scalar_prefetch = 0 : i64, scratch_operands = 0 : i64, tpu.core_type = #tpu.core_type<tc>, window_params = [{transform_indices = @transform_0, window_bounds = array<i64: 64, 864>}, {transform_indices = @transform_1, window_bounds = array<i64: 864, 128>}, {transform_indices = @transform_2, window_bounds = array<i64: 1, 128>}, {transform_indices = @transform_3, window_bounds = array<i64: 64, 128>}]} {
    %c0 = arith.constant 0 : index
    %c0_0 = arith.constant 0 : index
    %0 = vector.load %arg2[%c0, %c0_0] : memref<64x864xbf16, #tpu.memory_space<vmem>>, vector<64x864xbf16>
    %c0_1 = arith.constant 0 : index
    %c0_2 = arith.constant 0 : index
    %1 = vector.load %arg3[%c0_1, %c0_2] : memref<864x128xbf16, #tpu.memory_space<vmem>>, vector<864x128xbf16>
    %cst = arith.constant dense<0.000000e+00> : vector<64x128xf32>
    %2 = tpu.matmul %0, %1, %cst {dimension_numbers = #tpu.dot_dimension_numbers<[1], [0], [0], [1], [0, 0, 1, 1], [], []>} : vector<64x864xbf16>, vector<864x128xbf16>, vector<64x128xf32> -> vector<64x128xf32>
    %c0_3 = arith.constant 0 : index
    %c0_4 = arith.constant 0 : index
    %3 = vector.load %arg4[%c0_3, %c0_4] : memref<1x128xf32, #tpu.memory_space<vmem>>, vector<1x128xf32>
    %4 = vector.broadcast %3 : vector<1x128xf32> to vector<64x128xf32>
    %5 = arith.addf %2, %4 : vector<64x128xf32>
    %cst_5 = arith.constant 0.000000e+00 : f32
    %6 = vector.broadcast %cst_5 : f32 to vector<64x128xf32>
    %7 = arith.cmpf oge, %5, %6 : vector<64x128xf32>
    %cst_6 = arith.constant 2.000000e-01 : f32
    %8 = vector.broadcast %cst_6 : f32 to vector<64x128xf32>
    %9 = arith.mulf %8, %5 : vector<64x128xf32>
    %10 = arith.select %7, %5, %9 : vector<64x128xi1>, vector<64x128xf32>
    %c0_7 = arith.constant 0 : index
    %c0_8 = arith.constant 0 : index
    %11 = vector.load %arg5[%c0_7, %c0_8] : memref<64x128xf32, #tpu.memory_space<vmem>>, vector<64x128xf32>
    tpu.vector_store %arg5[%c0_7, %c0_8], %10 {strides = array<i32>} : memref<64x128xf32, #tpu.memory_space<vmem>>, vector<64x128xf32>,
    return
  }
  func.func @transform_0(%arg0: i32, %arg1: i32) -> (i32, i32) {
    %c0_i32 = arith.constant 0 : i32
    %c0_i32_0 = arith.constant 0 : i32
    return %arg0, %c0_i32 : i32, i32
  }
  func.func @transform_1(%arg0: i32, %arg1: i32) -> (i32, i32) {
    %c0_i32 = arith.constant 0 : i32
    %c0_i32_0 = arith.constant 0 : i32
    return %c0_i32, %arg1 : i32, i32
  }
  func.func @transform_2(%arg0: i32, %arg1: i32) -> (i32, i32) {
    %c0_i32 = arith.constant 0 : i32
    %c0_i32_0 = arith.constant 0 : i32
    return %c0_i32, %arg1 : i32, i32
  }
  func.func @transform_3(%arg0: i32, %arg1: i32) -> (i32, i32) {
    %c0_i32 = arith.constant 0 : i32
    return %arg0, %arg1 : i32, i32
  }
}

module attributes {stable_mosaic.version = 11 : i64} {
  func.func @_gemm_bias_lrelu_single_k_kernel(%arg0: i32, %arg1: i32, %arg2: memref<64x48xbf16, #tpu.memory_space<vmem>>, %arg3: memref<48x384xbf16, #tpu.memory_space<vmem>>, %arg4: memref<1x384xf32, #tpu.memory_space<vmem>>, %arg5: memref<64x384xf32, #tpu.memory_space<vmem>>) attributes {dimension_semantics = [#tpu.dimension_semantics<parallel>, #tpu.dimension_semantics<parallel>], iteration_bounds = array<i64: 2, 1>, scalar_prefetch = 0 : i64, scratch_operands = 0 : i64, tpu.core_type = #tpu.core_type<tc>, window_params = [{transform_indices = @transform_0, window_bounds = array<i64: 64, 48>}, {transform_indices = @transform_1, window_bounds = array<i64: 48, 384>}, {transform_indices = @transform_2, window_bounds = array<i64: 1, 384>}, {transform_indices = @transform_3, window_bounds = array<i64: 64, 384>}]} {
    %c0 = arith.constant 0 : index
    %c0_0 = arith.constant 0 : index
    %0 = vector.load %arg2[%c0, %c0_0] : memref<64x48xbf16, #tpu.memory_space<vmem>>, vector<64x48xbf16>
    %c0_1 = arith.constant 0 : index
    %c0_2 = arith.constant 0 : index
    %1 = vector.load %arg3[%c0_1, %c0_2] : memref<48x384xbf16, #tpu.memory_space<vmem>>, vector<48x384xbf16>
    %cst = arith.constant dense<0.000000e+00> : vector<64x384xf32>
    %2 = tpu.matmul %0, %1, %cst {dimension_numbers = #tpu.dot_dimension_numbers<[1], [0], [0], [1], [0, 0, 1, 1], [], []>} : vector<64x48xbf16>, vector<48x384xbf16>, vector<64x384xf32> -> vector<64x384xf32>
    %c0_3 = arith.constant 0 : index
    %c0_4 = arith.constant 0 : index
    %3 = vector.load %arg4[%c0_3, %c0_4] : memref<1x384xf32, #tpu.memory_space<vmem>>, vector<1x384xf32>
    %4 = vector.broadcast %3 : vector<1x384xf32> to vector<64x384xf32>
    %5 = arith.addf %2, %4 : vector<64x384xf32>
    %cst_5 = arith.constant 0.000000e+00 : f32
    %6 = vector.broadcast %cst_5 : f32 to vector<64x384xf32>
    %7 = arith.cmpf oge, %5, %6 : vector<64x384xf32>
    %cst_6 = arith.constant 2.000000e-01 : f32
    %8 = vector.broadcast %cst_6 : f32 to vector<64x384xf32>
    %9 = arith.mulf %8, %5 : vector<64x384xf32>
    %10 = arith.select %7, %5, %9 : vector<64x384xi1>, vector<64x384xf32>
    %c0_7 = arith.constant 0 : index
    %c0_8 = arith.constant 0 : index
    %11 = vector.load %arg5[%c0_7, %c0_8] : memref<64x384xf32, #tpu.memory_space<vmem>>, vector<64x384xf32>
    tpu.vector_store %arg5[%c0_7, %c0_8], %10 {strides = array<i32>} : memref<64x384xf32, #tpu.memory_space<vmem>>, vector<64x384xf32>,
    return
  }
  func.func @transform_0(%arg0: i32, %arg1: i32) -> (i32, i32) {
    %c0_i32 = arith.constant 0 : i32
    %c0_i32_0 = arith.constant 0 : i32
    return %arg0, %c0_i32 : i32, i32
  }
  func.func @transform_1(%arg0: i32, %arg1: i32) -> (i32, i32) {
    %c0_i32 = arith.constant 0 : i32
    %c0_i32_0 = arith.constant 0 : i32
    return %c0_i32, %arg1 : i32, i32
  }
  func.func @transform_2(%arg0: i32, %arg1: i32) -> (i32, i32) {
    %c0_i32 = arith.constant 0 : i32
    %c0_i32_0 = arith.constant 0 : i32
    return %c0_i32, %arg1 : i32, i32
  }
  func.func @transform_3(%arg0: i32, %arg1: i32) -> (i32, i32) {
    %c0_i32 = arith.constant 0 : i32
    return %arg0, %arg1 : i32, i32
  }
}

</mosaic_0001>

<bundles_post_ra>
// kernel: inception_reduction_a.5
= control target key start
LH: loop header
LB: loop body
LE: loop exit
PB: predicated region body
PF: predicated region fallthrough
CT: control target
= control target key end

     0   :  { %s1265_s12 = smov 0   ;;  %s1267_s13 = smov 0   ;;  %s1399_s0 = inlined_call_operand.vmem [shape: bf16[512,16], index: 0, kind: input, shape index: {}]   ;;  %s1400_s1 = inlined_call_operand.vmem [shape: bf16[16,128], index: 1, kind: input, shape index: {}]   ;;  %s1401_s2 = inlined_call_operand.vmem [shape: f32[1,128], index: 2, kind: input, shape index: {}]   ;;  %s1402_s3 = inlined_call_operand.vmem [shape: bf16[512,128], index: 3, kind: output, shape index: {}]  }
   0x1   :  { %s1269_s14 = smov 0  }
   0x2 LB: > { %s25_s15 = sadd.s32 1, %s1239_s13  ;;  %p927_p0 = scmp.ge.s32.totalorder %s1243_s14, 1  ;;  %s1243_s14 = sphi %s1269_s14, %s13_s14   ;;  %s1239_s13 = sphi %s1267_s13, %s1404_s13   ;;  %s1235_s12 = sphi %s1265_s12, %s1403_s12  }
   0x3   : > { %p27_p1 = scmp.ge.s32.totalorder %s25_s15, 2  ;;  %p169_p2 = scmp.lt.s32.totalorder %s1243_s14, 3 }
   0x5   : > { %s1406_s15 = smov (%p27_p1, %s25_s15), 0  ;;  %p170_p3 = pnand %p927_p0, %p169_p2 }
   0x6   : > { %s928_s18 = sshll.u32 (!%p170_p3), %s1235_s12, 5 }
   0x7   : > { %173 = sbr.rel (%p170_p3) target bundleno = 251 (0xfb), region = 32  ;;  %p204_p4 = scmp.lt.s32.totalorder (!%p170_p3), %s928_s18, 63 }
   0xc   : > { %v1204_v0 = vld [vmem:[%s1400_s1] sm:$0xff]   ;;  %s1408_s18 = smov (!%p204_p4, %s928_s18), 63  ;;  %vm353_vm0 = vcmask 130048  }
   0xd   : > { %1144 = vmatprep.subr.bf16.mxu0 %v1204_v0  ;;  %1178 = vmatprep.subr.bf16.mxu1 %v1204_v0  ;;  %s929_s19 = sshll.u32 %s1408_s18, 2  ;;  %v1331_v17 = vld [vmem:[%s1401_s2] ss:$0 sm:$0xff] }
   0xe   : > { %1145 = vmatpush3.bf16.msra.mxu0 %v1204_v0  ;;  %1179 = vmatpush3.bf16.msra.mxu1 %v1204_v0  ;;  %s1294_s22 = scalar_lea.vmem %s1399_s0, %s929_s19  ;;  %s1346_s27 = scalar_lea.vmem %s1402_s3, %s929_s19 }
   0xf   : > { %v1205_v1 = vld [vmem:[%s1294_s22] sm:$0xff]   ;;  %v1207_v3 = vld [vmem:[%s1294_s22 + $0x8] sm:$0xff]   ;;  %v1209_v5 = vld [vmem:[%s1294_s22 + $0x10] sm:$0xff]  }
  0x10   : > { %v1206_v2 = vld [vmem:[%s1294_s22 + $0x40] sm:$0xff]   ;;  %1146 = vmatprep.mubr.msk.bf16.mxu0 %vm353_vm0, %v1205_v1  ;;  %v1208_v4 = vld [vmem:[%s1294_s22 + $0x48] sm:$0xff]   ;;  %v1210_v6 = vld [vmem:[%s1294_s22 + $0x50] sm:$0xff]  }
  0x11   : > { %1162 = vmatprep.mubr.msk.bf16.mxu1 %vm353_vm0, %v1206_v2  ;;  %1147 = vmatmul.mubr.msk.bf16.vlgmr.msra.gmra.mxu0 %vm353_vm0, %v1207_v3  ;;  %v1211_v7 = vld [vmem:[%s1294_s22 + $0x18] sm:$0xff]   ;;  %v1213_v9 = vld [vmem:[%s1294_s22 + $0x20] sm:$0xff]   ;;  %v1215_v11 = vld [vmem:[%s1294_s22 + $0x28] sm:$0xff]  }
  0x12   : > { %1163 = vmatmul.mubr.msk.bf16.vlgmr.msra.gmra.mxu1 %vm353_vm0, %v1208_v4  ;;  %1150 = vmatprep.mubr.msk.bf16.mxu0 %vm353_vm0, %v1209_v5  ;;  %v1212_v8 = vld [vmem:[%s1294_s22 + $0x58] sm:$0xff]   ;;  %v1214_v10 = vld [vmem:[%s1294_s22 + $0x60] sm:$0xff]   ;;  %v1216_v12 = vld [vmem:[%s1294_s22 + $0x68] sm:$0xff]  }
  0x13   : > { %1166 = vmatprep.mubr.msk.bf16.mxu1 %vm353_vm0, %v1210_v6  ;;  %v1217_v13 = vld [vmem:[%s1294_s22 + $0x30] sm:$0xff]   ;;  %v1219_v15 = vld [vmem:[%s1294_s22 + $0x38] sm:$0xff]  }
  0x14   : > { %v1218_v14 = vld [vmem:[%s1294_s22 + $0x70] sm:$0xff]   ;;  %v1220_v16 = vld [vmem:[%s1294_s22 + $0x78] sm:$0xff]  }
  0x19   : > { %1151 = vmatmul.mubr.msk.bf16.gmra.mxu0 %vm353_vm0, %v1211_v7 }
  0x1a   : > { %1167 = vmatmul.mubr.msk.bf16.gmra.mxu1 %vm353_vm0, %v1212_v8  ;;  %1154 = vmatprep.mubr.msk.bf16.mxu0 %vm353_vm0, %v1213_v9 }
  0x1b   : > { %1170 = vmatprep.mubr.msk.bf16.mxu1 %vm353_vm0, %v1214_v10 }
  0x21   : > { %1155 = vmatmul.mubr.msk.bf16.gmra.mxu0 %vm353_vm0, %v1215_v11 }
  0x22   : > { %1171 = vmatmul.mubr.msk.bf16.gmra.mxu1 %vm353_vm0, %v1216_v12  ;;  %1158 = vmatprep.mubr.msk.bf16.mxu0 %vm353_vm0, %v1217_v13 }
  0x23   : > { %1174 = vmatprep.mubr.msk.bf16.mxu1 %vm353_vm0, %v1218_v14 }
  0x29   : > { %1159 = vmatmul.mubr.msk.bf16.gmra.mxu0 %vm353_vm0, %v1219_v15 }
  0x2a   : > { %1175 = vmatmul.mubr.msk.bf16.gmra.mxu1 %vm353_vm0, %v1220_v16 }
  0xd1   : > { %v1148_v18 = vpop.f32.mrf.mxu0 }
  0xd2   : > { %v445_v19 = vadd.f32 %v1148_v18, %v1331_v17  ;;  %v1164_v20 = vpop.f32.mrf.mxu1 }
  0xd3   : > { %v509_v21 = vadd.f32 %v1164_v20, %v1331_v17  ;;  %v436_v22 = vpop.f32.mrf.mxu0 }
  0xd4   : > { %vm565_vm1 = vcmp.ge.f32.partialorder %v445_v19, 0.0  ;;  %v597_v23 = vmul.f32 0.2, %v445_v19  ;;  %v437_v24 = vadd.f32 %v1331_v17, %v436_v22  ;;  %v500_v25 = vpop.f32.mrf.mxu1 }
  0xd5   : > { %vm581_vm2 = vcmp.ge.f32.partialorder %v509_v21, 0.0  ;;  %v613_v26 = vmul.f32 0.2, %v509_v21  ;;  %v501_v27 = vadd.f32 %v1331_v17, %v500_v25  ;;  %v1149_v28 = vpop.f32.mrf.mxu0 }
  0xd6   : > { %v629_v29 = vsel %vm565_vm1, %v445_v19, %v597_v23  ;;  %vm563_vm3 = vcmp.ge.f32.partialorder %v437_v24, 0.0  ;;  %v595_v30 = vmul.f32 0.2, %v437_v24  ;;  %v448_v31 = vadd.f32 %v1149_v28, %v1331_v17  ;;  %v1165_v32 = vpop.f32.mrf.mxu1 }
  0xd7   : > { %v645_v33 = vsel %vm581_vm2, %v509_v21, %v613_v26  ;;  %vm579_vm4 = vcmp.ge.f32.partialorder %v501_v27, 0.0  ;;  %v611_v34 = vmul.f32 0.2, %v501_v27  ;;  %v512_v35 = vadd.f32 %v1165_v32, %v1331_v17  ;;  %v439_v36 = vpop.f32.mrf.mxu0 }
  0xd8   : > { %v627_v37 = vsel %vm563_vm3, %v437_v24, %v595_v30  ;;  %vm566_vm5 = vcmp.ge.f32.partialorder %v448_v31, 0.0  ;;  %v598_v38 = vmul.f32 0.2, %v448_v31  ;;  %v440_v39 = vadd.f32 %v1331_v17, %v439_v36  ;;  %v503_v40 = vpop.f32.mrf.mxu1 }
  0xd9   : > { %v643_v41 = vsel %vm579_vm4, %v501_v27, %v611_v34  ;;  %vm582_vm6 = vcmp.ge.f32.partialorder %v512_v35, 0.0  ;;  %v614_v42 = vmul.f32 0.2, %v512_v35  ;;  %v504_v43 = vadd.f32 %v1331_v17, %v503_v40  ;;  %v1152_v44 = vpop.f32.mrf.mxu0 }
  0xda   : > { %v630_v45 = vsel %vm566_vm5, %v448_v31, %v598_v38  ;;  %vm564_vm7 = vcmp.ge.f32.partialorder %v440_v39, 0.0  ;;  %v596_v46 = vmul.f32 0.2, %v440_v39  ;;  %v461_v47 = vadd.f32 %v1152_v44, %v1331_v17  ;;  %v1168_v48 = vpop.f32.mrf.mxu1 }
  0xdb   : > { %v1040_v49 = vpack.c.bf16 %v630_v45, %v629_v29  ;;  %v646_v50 = vsel %vm582_vm6, %v512_v35, %v614_v42  ;;  %vm580_vm8 = vcmp.ge.f32.partialorder %v504_v43, 0.0  ;;  %v612_v51 = vmul.f32 0.2, %v504_v43  ;;  %v452_v52 = vpop.f32.mrf.mxu0 }
  0xdc   : > { %v1080_v53 = vpack.c.bf16 %v646_v50, %v645_v33  ;;  %v628_v54 = vsel %vm564_vm7, %v440_v39, %v596_v46  ;;  %vm569_vm9 = vcmp.ge.f32.partialorder %v461_v47, 0.0  ;;  %v601_v55 = vmul.f32 0.2, %v461_v47  ;;  %v516_v56 = vpop.f32.mrf.mxu1 }
  0xdd   : > { %1112 = vst [vmem:[%s1346_s27 + $0x8] sm:$0xff] %v1040_v49   ;;  %v1035_v57 = vpack.c.bf16 %v628_v54, %v627_v37  ;;  %v644_v58 = vsel %vm580_vm8, %v504_v43, %v612_v51  ;;  %v525_v59 = vadd.f32 %v1168_v48, %v1331_v17  ;;  %v453_v60 = vadd.f32 %v1331_v17, %v452_v52  ;;  %v1153_v61 = vpop.f32.mrf.mxu0 }
  0xde   : > { %1120 = vst [vmem:[%s1346_s27 + $0x48] sm:$0xff] %v1080_v53   ;;  %v1075_v62 = vpack.c.bf16 %v644_v58, %v643_v41  ;;  %v633_v63 = vsel %vm569_vm9, %v461_v47, %v601_v55  ;;  %v517_v0 = vadd.f32 %v1331_v17, %v516_v56  ;;  %v464_v1 = vadd.f32 %v1153_v61, %v1331_v17  ;;  %v1169_v2 = vpop.f32.mrf.mxu1 }
  0xdf   : > { %1036 = vst [vmem:[%s1346_s27] sm:$0xff] %v1035_v57   ;;  %vm585_vm10 = vcmp.ge.f32.partialorder %v525_v59, 0.0  ;;  %v617_v3 = vmul.f32 0.2, %v525_v59  ;;  %vm567_vm11 = vcmp.ge.f32.partialorder %v453_v60, 0.0  ;;  %v599_v4 = vmul.f32 0.2, %v453_v60  ;;  %v455_v5 = vpop.f32.mrf.mxu0 }
  0xe0   : > { %1119 = vst [vmem:[%s1346_s27 + $0x40] sm:$0xff] %v1075_v62   ;;  %vm583_vm12 = vcmp.ge.f32.partialorder %v517_v0, 0.0  ;;  %v615_v6 = vmul.f32 0.2, %v517_v0  ;;  %vm570_vm13 = vcmp.ge.f32.partialorder %v464_v1, 0.0  ;;  %v519_v8 = vpop.f32.mrf.mxu1  ;;  %v528_v11 = vadd.f32 %v1169_v2, %v1331_v17 }
  0xe1   : > { %v602_v7 = vmul.f32 0.2, %v464_v1  ;;  %v649_v9 = vsel %vm585_vm10, %v525_v59, %v617_v3  ;;  %v631_v10 = vsel %vm567_vm11, %v453_v60, %v599_v4  ;;  %v456_v12 = vadd.f32 %v1331_v17, %v455_v5  ;;  %v1156_v13 = vpop.f32.mrf.mxu0 }
  0xe2   : > { %v647_v14 = vsel %vm583_vm12, %v517_v0, %v615_v6  ;;  %v520_v16 = vadd.f32 %v1331_v17, %v519_v8  ;;  %v477_v18 = vadd.f32 %v1156_v13, %v1331_v17  ;;  %v1172_v19 = vpop.f32.mrf.mxu1  ;;  %vm586_vm14 = vcmp.ge.f32.partialorder %v528_v11, 0.0 }
  0xe3   : > { %v634_v15 = vsel %vm570_vm13, %v464_v1, %v602_v7  ;;  %v618_v21 = vmul.f32 0.2, %v528_v11  ;;  %vm568_vm15 = vcmp.ge.f32.partialorder %v456_v12, 0.0  ;;  %v468_v22 = vpop.f32.mrf.mxu0  ;;  %v600_v23 = vmul.f32 0.2, %v456_v12 }
  0xe4   : > { %v1050_v20 = vpack.c.bf16 %v634_v15, %v633_v63  ;;  %vm584_vm0 = vcmp.ge.f32.partialorder %v520_v16, 0.0  ;;  %v616_v24 = vmul.f32 0.2, %v520_v16  ;;  %vm573_vm1 = vcmp.ge.f32.partialorder %v477_v18, 0.0  ;;  %v532_v25 = vpop.f32.mrf.mxu1 }
  0xe5   : > { %v650_v26 = vsel %vm586_vm14, %v528_v11, %v618_v21  ;;  %v605_v27 = vmul.f32 0.2, %v477_v18  ;;  %v541_v28 = vadd.f32 %v1172_v19, %v1331_v17  ;;  %v469_v29 = vadd.f32 %v1331_v17, %v468_v22  ;;  %v1157_v30 = vpop.f32.mrf.mxu0 }
  0xe6   : > { %1114 = vst [vmem:[%s1346_s27 + $0x18] sm:$0xff] %v1050_v20   ;;  %v1090_v31 = vpack.c.bf16 %v650_v26, %v649_v9  ;;  %v632_v32 = vsel %vm568_vm15, %v456_v12, %v600_v23  ;;  %v648_v33 = vsel %vm584_vm0, %v520_v16, %v616_v24  ;;  %v533_v34 = vadd.f32 %v1331_v17, %v532_v25  ;;  %v1173_v35 = vpop.f32.mrf.mxu1 }
  0xe7   : > { %v1045_v36 = vpack.c.bf16 %v632_v32, %v631_v10  ;;  %v1085_v37 = vpack.c.bf16 %v648_v33, %v647_v14  ;;  %vm589_vm2 = vcmp.ge.f32.partialorder %v541_v28, 0.0  ;;  %v471_v38 = vpop.f32.mrf.mxu0  ;;  %v637_v39 = vsel %vm573_vm1, %v477_v18, %v605_v27 }
  0xe8   : > { %1122 = vst [vmem:[%s1346_s27 + $0x58] sm:$0xff] %v1090_v31   ;;  %v621_v40 = vmul.f32 0.2, %v541_v28  ;;  %vm571_vm3 = vcmp.ge.f32.partialorder %v469_v29, 0.0  ;;  %v603_v41 = vmul.f32 0.2, %v469_v29  ;;  %v535_v42 = vpop.f32.mrf.mxu1  ;;  %v480_v44 = vadd.f32 %v1157_v30, %v1331_v17 }
  0xe9   : > { %1113 = vst [vmem:[%s1346_s27 + $0x10] sm:$0xff] %v1045_v36   ;;  %1121 = vst [vmem:[%s1346_s27 + $0x50] sm:$0xff] %v1085_v37   ;;  %v619_v43 = vmul.f32 0.2, %v533_v34  ;;  %v544_v45 = vadd.f32 %v1173_v35, %v1331_v17  ;;  %v472_v46 = vadd.f32 %v1331_v17, %v471_v38  ;;  %v1160_v47 = vpop.f32.mrf.mxu0  ;;  %vm587_vm4 = vcmp.ge.f32.partialorder %v533_v34, 0.0 }
  0xea   : > { %v653_v48 = vsel %vm589_vm2, %v541_v28, %v621_v40  ;;  %v536_v49 = vadd.f32 %v1331_v17, %v535_v42  ;;  %v493_v50 = vadd.f32 %v1160_v47, %v1331_v17  ;;  %v1176_v51 = vpop.f32.mrf.mxu1  ;;  %v635_v52 = vsel %vm571_vm3, %v469_v29, %v603_v41 }
  0xeb   : > { %vm574_vm5 = vcmp.ge.f32.partialorder %v480_v44, 0.0  ;;  %v606_v53 = vmul.f32 0.2, %v480_v44  ;;  %vm590_vm6 = vcmp.ge.f32.partialorder %v544_v45, 0.0  ;;  %v484_v54 = vpop.f32.mrf.mxu0  ;;  %v622_v55 = vmul.f32 0.2, %v544_v45 }
  0xec   : > { %vm572_vm7 = vcmp.ge.f32.partialorder %v472_v46, 0.0  ;;  %v604_v56 = vmul.f32 0.2, %v472_v46  ;;  %vm588_vm8 = vcmp.ge.f32.partialorder %v536_v49, 0.0  ;;  %v548_v57 = vpop.f32.mrf.mxu1  ;;  %v651_v58 = vsel %vm587_vm4, %v533_v34, %v619_v43 }
  0xed   : > { %v638_v59 = vsel %vm574_vm5, %v480_v44, %v606_v53  ;;  %v620_v60 = vmul.f32 0.2, %v536_v49  ;;  %v609_v61 = vmul.f32 0.2, %v493_v50  ;;  %v1161_v62 = vpop.f32.mrf.mxu0  ;;  %v654_v0 = vsel %vm590_vm6, %v544_v45, %v622_v55 }
  0xee   : > { %v1060_v63 = vpack.c.bf16 %v638_v59, %v637_v39  ;;  %v636_v1 = vsel %vm572_vm7, %v472_v46, %v604_v56  ;;  %v557_v2 = vadd.f32 %v1176_v51, %v1331_v17  ;;  %v1177_v3 = vpop.f32.mrf.mxu1  ;;  %v1100_v4 = vpack.c.bf16 %v654_v0, %v653_v48 }
  0xef   : > { %v1055_v5 = vpack.c.bf16 %v636_v1, %v635_v52  ;;  %v652_v6 = vsel %vm588_vm8, %v536_v49, %v620_v60  ;;  %vm577_vm9 = vcmp.ge.f32.partialorder %v493_v50, 0.0  ;;  %v487_v7 = vpop.f32.mrf.mxu0  ;;  %v485_v9 = vadd.f32 %v1331_v17, %v484_v54 }
  0xf0   : > { %1116 = vst [vmem:[%s1346_s27 + $0x28] sm:$0xff] %v1060_v63   ;;  %v1095_v8 = vpack.c.bf16 %v652_v6, %v651_v58  ;;  %v551_v10 = vpop.f32.mrf.mxu1  ;;  %1124 = vst [vmem:[%s1346_s27 + $0x68] sm:$0xff] %v1100_v4   ;;  %v549_v11 = vadd.f32 %v1331_v17, %v548_v57  ;;  %v496_v12 = vadd.f32 %v1161_v62, %v1331_v17  ;;  %vm593_vm10 = vcmp.ge.f32.partialorder %v557_v2, 0.0 }
  0xf1   : > { %1115 = vst [vmem:[%s1346_s27 + $0x20] sm:$0xff] %v1055_v5   ;;  %v560_v13 = vadd.f32 %v1177_v3, %v1331_v17  ;;  %v488_v14 = vadd.f32 %v1331_v17, %v487_v7  ;;  %v641_v15 = vsel %vm577_vm9, %v493_v50, %v609_v61  ;;  %v625_v16 = vmul.f32 0.2, %v557_v2 }
  0xf2   : > { %1123 = vst [vmem:[%s1346_s27 + $0x60] sm:$0xff] %v1095_v8   ;;  %v552_v18 = vadd.f32 %v1331_v17, %v551_v10  ;;  %vm575_vm11 = vcmp.ge.f32.partialorder %v485_v9, 0.0  ;;  %v607_v19 = vmul.f32 0.2, %v485_v9  ;;  %vm578_vm12 = vcmp.ge.f32.partialorder %v496_v12, 0.0 }
  0xf3   : > { %v610_v20 = vmul.f32 0.2, %v496_v12  ;;  %v623_v21 = vmul.f32 0.2, %v549_v11  ;;  %vm594_vm13 = vcmp.ge.f32.partialorder %v560_v13, 0.0  ;;  %vm576_vm14 = vcmp.ge.f32.partialorder %v488_v14, 0.0 }
  0xf4   : > { %v626_v22 = vmul.f32 0.2, %v560_v13  ;;  %vm591_vm15 = vcmp.ge.f32.partialorder %v549_v11, 0.0  ;;  %v608_v24 = vmul.f32 0.2, %v488_v14  ;;  %vm592_vm0 = vcmp.ge.f32.partialorder %v552_v18, 0.0 }
  0xf5   : > { %v642_v23 = vsel %vm578_vm12, %v496_v12, %v610_v20  ;;  %v657_v25 = vsel %vm593_vm10, %v557_v2, %v625_v16  ;;  %v624_v17 = vmul.f32 0.2, %v552_v18  ;;  %v639_v28 = vsel %vm575_vm11, %v485_v9, %v607_v19 }
  0xf6   : > { %v1070_v26 = vpack.c.bf16 %v642_v23, %v641_v15  ;;  %v658_v27 = vsel %vm594_vm13, %v560_v13, %v626_v22  ;;  %v640_v30 = vsel %vm576_vm14, %v488_v14, %v608_v24  ;;  %v655_v31 = vsel %vm591_vm15, %v549_v11, %v623_v21 }
  0xf7   : > { %v1110_v29 = vpack.c.bf16 %v658_v27, %v657_v25  ;;  %v1065_v32 = vpack.c.bf16 %v640_v30, %v639_v28  ;;  %v656_v33 = vsel %vm592_vm0, %v552_v18, %v624_v17 }
  0xf8   : > { %1118 = vst [vmem:[%s1346_s27 + $0x38] sm:$0xff] %v1070_v26   ;;  %v1105_v34 = vpack.c.bf16 %v656_v33, %v655_v31 }
  0xf9   : > { %1126 = vst [vmem:[%s1346_s27 + $0x78] sm:$0xff] %v1110_v29   ;;  %1117 = vst [vmem:[%s1346_s27 + $0x30] sm:$0xff] %v1065_v32  }
  0xfa   : > { %1125 = vst [vmem:[%s1346_s27 + $0x70] sm:$0xff] %v1105_v34  }
  0xfb PF: > { %s13_s14 = sadd.s32 1, %s1243_s14   ;;  %s1403_s12 = smov %s1239_s13 }
  0xfc   : > { %p10_p5 = scmp.ge.s32.totalorder %s13_s14, 4   ;;  %s1404_s13 = smov %s1406_s15 }
  0xfe   :  { %12 = sbr.rel (!%p10_p5) target bundleno = 2 (0x2), region = 68 }

// kernel: inception_reduction_a.6
= control target key start
LH: loop header
LB: loop body
LE: loop exit
PB: predicated region body
PF: predicated region fallthrough
CT: control target
= control target key end

     0   :  { %s2732_s12 = smov 0   ;;  %s2734_s13 = smov 0   ;;  %s3272_s0 = inlined_call_operand.vmem [shape: bf16[512,576], index: 0, kind: input, shape index: {}]   ;;  %s3273_s1 = inlined_call_operand.vmem [shape: bf16[576,128], index: 1, kind: input, shape index: {}]   ;;  %s3274_s2 = inlined_call_operand.vmem [shape: f32[1,128], index: 2, kind: input, shape index: {}]   ;;  %s3275_s3 = inlined_call_operand.vmem [shape: bf16[512,128], index: 3, kind: output, shape index: {}]  }
   0x1   :  { %s2736_s14 = smov 0  }
   0x2 LB: > { %s25_s15 = sadd.s32 1, %s2706_s13  ;;  %p1916_p0 = scmp.ge.s32.totalorder %s2710_s14, 1  ;;  %s2710_s14 = sphi %s2736_s14, %s13_s14   ;;  %s2706_s13 = sphi %s2734_s13, %s3315_s13   ;;  %s2702_s12 = sphi %s2732_s12, %s3314_s12  }
   0x3   : > { %p27_p1 = scmp.ge.s32.totalorder %s25_s15, 2  ;;  %p170_p2 = scmp.lt.s32.totalorder %s2710_s14, 3 }
   0x5   : > { %s3317_s15 = smov (%p27_p1, %s25_s15), 0  ;;  %p171_p3 = pnand %p1916_p0, %p170_p2 }
   0x7   : > { %174 = sbr.rel (%p171_p3) target bundleno = 408 (0x198), region = 32 }
   0xc   : > { %v2540_v0 = vld [vmem:[%s3273_s1 + $0x78] sm:$0xff]   ;;  %s1917_s18 = sshll.u32 %s2702_s12, 5  ;;  %v2542_v2 = vld [vmem:[%s3273_s1 + $0x70] sm:$0xff]   ;;  %v2544_v4 = vld [vmem:[%s3273_s1 + $0x68] sm:$0xff]   ;;  %vm1020_vm0 = vcmask 523264  }
   0xd   : > { %v2541_v1 = vld [vmem:[%s3273_s1 + $0x38] sm:$0xff]   ;;  %2215 = vmatprep.subr.bf16.mxu0 %v2540_v0  ;;  %2499 = vmatprep.subr.bf16.mxu1 %v2540_v0  ;;  %p206_p4 = scmp.lt.s32.totalorder %s1917_s18, 63  ;;  %v2543_v3 = vld [vmem:[%s3273_s1 + $0x30] sm:$0xff]   ;;  %v2545_v5 = vld [vmem:[%s3273_s1 + $0x28] sm:$0xff]  }
   0xe   : > { %2216 = vmatpush3.bf16.msra.mxu0 %v2541_v1  ;;  %2507 = vmatpush3.bf16.msra.mxu1 %v2541_v1  ;;  %v2546_v6 = vld [vmem:[%s3273_s1 + $0x60] sm:$0xff]   ;;  %v2548_v8 = vld [vmem:[%s3273_s1 + $0x58] sm:$0xff]   ;;  %v2550_v10 = vld [vmem:[%s3273_s1 + $0x50] sm:$0xff]  }
   0xf   : > { %2217 = vmatprep.subr.bf16.mxu0 %v2542_v2  ;;  %2500 = vmatprep.subr.bf16.mxu1 %v2542_v2  ;;  %s3319_s18 = smov (!%p206_p4, %s1917_s18), 63  ;;  %v2547_v7 = vld [vmem:[%s3273_s1 + $0x20] sm:$0xff]   ;;  %v2549_v9 = vld [vmem:[%s3273_s1 + $0x18] sm:$0xff]   ;;  %v2551_v13 = vld [vmem:[%s3273_s1 + $0x10] sm:$0xff]  }
  0x10   : > { %s2515_s4 = smul.u32 20, %s3319_s18  ;;  %v2552_v14 = vld [vmem:[%s3273_s1 + $0x48] sm:$0xff]   ;;  %v2554_v16 = vld [vmem:[%s3273_s1 + $0x40] sm:$0xff]   ;;  %v2562_v18 = vld [vmem:[%s3273_s1 + $0xf8] sm:$0xff]   ;;  %s1920_s27 = sshll.u32 %s3319_s18, 2 }
  0x11   : > { %v2553_v15 = vld [vmem:[%s3273_s1 + $0x8] sm:$0xff]   ;;  %v2555_v17 = vld [vmem:[%s3273_s1] sm:$0xff]   ;;  %v2565_v19 = vld [vmem:[%s3273_s1 + $0x118] sm:$0xff]   ;;  %s3137_s29 = scalar_lea.vmem %s3275_s3, %s1920_s27 }
  0x12   : > { %2218 = vmatpush3.bf16.msra.mxu0 %v2543_v3  ;;  %2508 = vmatpush3.bf16.msra.mxu1 %v2543_v3  ;;  %s2783_s11 = scalar_lea.vmem %s3272_s0, %s2515_s4  ;;  %v2563_v22 = vld [vmem:[%s3273_s1 + $0xb8] sm:$0xff]   ;;  %v2564_v23 = vld [vmem:[%s3273_s1 + $0xf0] sm:$0xff]   ;;  %v2573_v28 = vld [vmem:[%s3273_s1 + $0xe8] sm:$0xff]  }
  0x13   : > { %2219 = vmatprep.subr.bf16.mxu0 %v2544_v4  ;;  %2501 = vmatprep.subr.bf16.mxu1 %v2544_v4  ;;  %v2558_v11 = vld [vmem:[%s2783_s11 + $0x4] ss:$20 sps:$4 sm:$0xff]   ;;  %v2556_v20 = vld [vmem:[%s2783_s11] ss:$20 sps:$4 sm:$0xff]   ;;  %v2571_v27 = vld [vmem:[%s2783_s11 + $0x28] ss:$20 sps:$4 sm:$0xff]  }
  0x14   : > { %v2561_v12 = vld [vmem:[%s2783_s11 + $0x1e4] ss:$20 sps:$4 sm:$0xff]   ;;  %1101 = vmatprep.mubr.bf16.mxu0 %v2558_v11  ;;  %v2559_v21 = vld [vmem:[%s2783_s11 + $0x1e0] ss:$20 sps:$4 sm:$0xff]   ;;  %v2572_v29 = vld [vmem:[%s2783_s11 + $0x208] ss:$20 sps:$4 sm:$0xff]  }
  0x15   : > { %1197 = vmatprep.mubr.bf16.mxu1 %v2561_v12  ;;  %v2567_v24 = vld [vmem:[%s2783_s11 + $0x2c] ss:$20 sps:$4 sm:$0xff]   ;;  %v2566_v26 = vld [vmem:[%s3273_s1 + $0xb0] sm:$0xff]   ;;  %v2583_v37 = vld [vmem:[%s3273_s1 + $0xd8] sm:$0xff]  }
  0x16   : > { %2220 = vmatpush3.bf16.msra.mxu0 %v2545_v5  ;;  %2509 = vmatpush3.bf16.msra.mxu1 %v2545_v5  ;;  %v2569_v25 = vld [vmem:[%s2783_s11 + $0x20c] ss:$20 sps:$4 sm:$0xff]   ;;  %v2577_v32 = vld [vmem:[%s2783_s11 + $0x54] ss:$20 sps:$4 sm:$0xff]   ;;  %v2581_v36 = vld [vmem:[%s2783_s11 + $0x50] ss:$20 sps:$4 sm:$0xff]  }
  0x17   : > { %2221 = vmatprep.subr.bf16.mxu0 %v2546_v6  ;;  %2502 = vmatprep.subr.bf16.mxu1 %v2546_v6  ;;  %v2574_v30 = vld [vmem:[%s3273_s1 + $0xa8] sm:$0xff]   ;;  %v2575_v31 = vld [vmem:[%s3273_s1 + $0xe0] sm:$0xff]   ;;  %v2596_v35 = vld [vmem:[%s3273_s1 + $0x110] sm:$0xff]  }
  0x18   : > { %v2579_v33 = vld [vmem:[%s2783_s11 + $0x234] ss:$20 sps:$4 sm:$0xff]   ;;  %v2576_v34 = vld [vmem:[%s3273_s1 + $0xa0] sm:$0xff]   ;;  %v2584_v39 = vld [vmem:[%s3273_s1 + $0x98] sm:$0xff]  }
  0x19   : > { %v2582_v38 = vld [vmem:[%s2783_s11 + $0x230] ss:$20 sps:$4 sm:$0xff]   ;;  %v2591_v44 = vld [vmem:[%s2783_s11 + $0x78] ss:$20 sps:$4 sm:$0xff]   ;;  %v2600_v53 = vld [vmem:[%s2783_s11 + $0x8] ss:$20 sps:$4 sm:$0xff]  }
  0x1a   : > { %2222 = vmatpush3.bf16.msra.mxu0 %v2547_v7  ;;  %2510 = vmatpush3.bf16.msra.mxu1 %v2547_v7  ;;  %v2585_v40 = vld [vmem:[%s3273_s1 + $0xd0] sm:$0xff]   ;;  %v2592_v45 = vld [vmem:[%s2783_s11 + $0x258] ss:$20 sps:$4 sm:$0xff]   ;;  %v2595_v49 = vld [vmem:[%s3273_s1 + $0xc0] sm:$0xff]  }
  0x1b   : > { %2223 = vmatprep.subr.bf16.mxu0 %v2548_v8  ;;  %2503 = vmatprep.subr.bf16.mxu1 %v2548_v8  ;;  %v2587_v41 = vld [vmem:[%s2783_s11 + $0x7c] ss:$20 sps:$4 sm:$0xff]   ;;  %v2593_v46 = vld [vmem:[%s3273_s1 + $0xc8] sm:$0xff]   ;;  %v2598_v50 = vld [vmem:[%s2783_s11 + $0xa4] ss:$20 sps:$4 sm:$0xff]  }
  0x1c   : > { %v2589_v42 = vld [vmem:[%s2783_s11 + $0x25c] ss:$20 sps:$4 sm:$0xff]   ;;  %v2616_v47 = vld [vmem:[%s3273_s1 + $0x108] sm:$0xff]   ;;  %v2597_v52 = vld [vmem:[%s3273_s1 + $0x80] sm:$0xff]  }
  0x1d   : > { %v2586_v43 = vld [vmem:[%s3273_s1 + $0x90] sm:$0xff]   ;;  %v2594_v48 = vld [vmem:[%s3273_s1 + $0x88] sm:$0xff]   ;;  %v2635_v56 = vld [vmem:[%s3273_s1 + $0x100] sm:$0xff]  }
  0x1e   : > { %2224 = vmatpush3.bf16.msra.mxu0 %v2549_v9  ;;  %2511 = vmatpush3.bf16.msra.mxu1 %v2549_v9  ;;  %v2602_v51 = vld [vmem:[%s2783_s11 + $0xc] ss:$20 sps:$4 sm:$0xff]   ;;  %v2606_v57 = vld [vmem:[%s2783_s11 + $0x34] ss:$20 sps:$4 sm:$0xff]   ;;  %v2609_v59 = vld [vmem:[%s2783_s11 + $0x30] ss:$20 sps:$4 sm:$0xff]  }
  0x1f   : > { %2225 = vmatprep.subr.bf16.mxu0 %v2550_v10  ;;  %2504 = vmatprep.subr.bf16.mxu1 %v2550_v10  ;;  %v2603_v54 = vld [vmem:[%s2783_s11 + $0xa0] ss:$20 sps:$4 sm:$0xff]   ;;  %v2608_v58 = vld [vmem:[%s2783_s11 + $0xc8] ss:$20 sps:$4 sm:$0xff]   ;;  %v2614_v62 = vld [vmem:[%s2783_s11 + $0xf0] ss:$20 sps:$4 sm:$0xff]  }
  0x20   : > { %v2604_v55 = vld [vmem:[%s2783_s11 + $0xcc] ss:$20 sps:$4 sm:$0xff]   ;;  %v2610_v60 = vld [vmem:[%s2783_s11 + $0xf4] ss:$20 sps:$4 sm:$0xff]   ;;  %v2612_v61 = vld [vmem:[%s2783_s11 + $0x5c] ss:$20 sps:$4 sm:$0xff]  }
  0x21   : > { %v2615_v63 = vld [vmem:[%s2783_s11 + $0x58] ss:$20 sps:$4 sm:$0xff]   ;;  %v2617_v0 = vld [vmem:[%s2783_s11 + $0x11c] ss:$20 sps:$4 sm:$0xff]   ;;  %v2622_v3 = vld [vmem:[%s2783_s11 + $0x80] ss:$20 sps:$4 sm:$0xff]  }
  0x22   : > { %2226 = vmatpush3.bf16.msra.mxu0 %v2551_v13  ;;  %2512 = vmatpush3.bf16.msra.mxu1 %v2551_v13  ;;  %v2619_v1 = vld [vmem:[%s2783_s11 + $0x84] ss:$20 sps:$4 sm:$0xff]   ;;  %v2625_v5 = vld [vmem:[%s2783_s11 + $0xac] ss:$20 sps:$4 sm:$0xff]   ;;  %v2628_v7 = vld [vmem:[%s2783_s11 + $0xa8] ss:$20 sps:$4 sm:$0xff]  }
  0x23   : > { %2227 = vmatprep.subr.bf16.mxu0 %v2552_v14  ;;  %2505 = vmatprep.subr.bf16.mxu1 %v2552_v14  ;;  %v2621_v2 = vld [vmem:[%s2783_s11 + $0x118] ss:$20 sps:$4 sm:$0xff]   ;;  %v2627_v6 = vld [vmem:[%s2783_s11 + $0x140] ss:$20 sps:$4 sm:$0xff]   ;;  %v2633_v10 = vld [vmem:[%s2783_s11 + $0x168] ss:$20 sps:$4 sm:$0xff]  }
  0x24   : > { %v2623_v4 = vld [vmem:[%s2783_s11 + $0x144] ss:$20 sps:$4 sm:$0xff]   ;;  %v2629_v8 = vld [vmem:[%s2783_s11 + $0x16c] ss:$20 sps:$4 sm:$0xff]   ;;  %v2631_v9 = vld [vmem:[%s2783_s11 + $0xd4] ss:$20 sps:$4 sm:$0xff]  }
  0x25   : > { %v2634_v11 = vld [vmem:[%s2783_s11 + $0xd0] ss:$20 sps:$4 sm:$0xff]   ;;  %v2636_v12 = vld [vmem:[%s2783_s11 + $0x194] ss:$20 sps:$4 sm:$0xff]  }
  0x26   : > { %2228 = vmatpush3.bf16.msra.mxu0 %v2553_v15  ;;  %2513 = vmatpush3.bf16.msra.mxu1 %v2553_v15  ;;  %v2638_v13 = vld [vmem:[%s2783_s11 + $0xfc] ss:$20 sps:$4 sm:$0xff]   ;;  %v2641_v15 = vld [vmem:[%s2783_s11 + $0xf8] ss:$20 sps:$4 sm:$0xff]  }
  0x27   : > { %2229 = vmatprep.subr.bf16.mxu0 %v2554_v16  ;;  %2506 = vmatprep.subr.bf16.mxu1 %v2554_v16  ;;  %v2640_v14 = vld [vmem:[%s2783_s11 + $0x190] ss:$20 sps:$4 sm:$0xff]  }
  0x28   : > { %v2642_v16 = vld [vmem:[%s2783_s11 + $0x1bc] ss:$20 sps:$4 sm:$0xff]  }
  0x2a   : > { %2230 = vmatpush3.bf16.msra.mxu0 %v2555_v17  ;;  %2514 = vmatpush3.bf16.msra.mxu1 %v2555_v17  ;;  %v2644_v17 = vld [vmem:[%s2783_s11 + $0x124] ss:$20 sps:$4 sm:$0xff]  }
  0x2b   : > { %2327 = vmatprep.subr.bf16.mxu1 %v2562_v18  ;;  %2459 = vmatprep.subr.bf16.mxu0 %v2565_v19  ;;  %v2646_v18 = vld [vmem:[%s2783_s11 + $0x1b8] ss:$20 sps:$4 sm:$0xff]  }
  0x2d   : > { %1102 = vmatmul.mubr.bf16.vlgmr.msra.gmra.mxu0 %v2556_v20  ;;  %1198 = vmatmul.mubr.bf16.vlgmr.msra.gmra.mxu1 %v2559_v21  ;;  %v2648_v20 = vld [vmem:[%s2783_s11 + $0x14c] ss:$20 sps:$4 sm:$0xff]   ;;  %v2650_v21 = vld [vmem:[%s2783_s11 + $0x10] ss:$20 sps:$4 sm:$0xff]  }
  0x2e   : > { %2328 = vmatpush3.bf16.msra.mxu1 %v2563_v22  ;;  %2460 = vmatpush3.bf16.msra.mxu0 %v2565_v19  ;;  %v2647_v19 = vld [vmem:[%s2783_s11 + $0x120] ss:$20 sps:$4 sm:$0xff]   ;;  %v2651_v22 = vld [vmem:[%s2783_s11 + $0x148] ss:$20 sps:$4 sm:$0xff]  }
  0x2f   : > { %2329 = vmatprep.subr.bf16.mxu1 %v2564_v23  ;;  %1109 = vmatprep.mubr.bf16.mxu0 %v2567_v24  ;;  %v2652_v23 = vld [vmem:[%s2783_s11 + $0x38] ss:$20 sps:$4 sm:$0xff]   ;;  %v2653_v24 = vld [vmem:[%s2783_s11 + $0x174] ss:$20 sps:$4 sm:$0xff]  }
  0x30   : > { %1205 = vmatprep.mubr.bf16.mxu1 %v2569_v25  ;;  %2461 = vmatprep.subr.bf16.mxu0 %v2596_v35  ;;  %v2655_v25 = vld [vmem:[%s2783_s11 + $0x60] ss:$20 sps:$4 sm:$0xff]  }
  0x32   : > { %2330 = vmatpush3.bf16.msra.mxu1 %v2566_v26  ;;  %2462 = vmatpush3.bf16.msra.mxu0 %v2596_v35  ;;  %v2656_v26 = vld [vmem:[%s2783_s11 + $0x170] ss:$20 sps:$4 sm:$0xff]   ;;  %v2667_v35 = vld [vmem:[%s2783_s11 + $0x128] ss:$20 sps:$4 sm:$0xff]  }
  0x33   : > { %2331 = vmatprep.subr.bf16.mxu1 %v2573_v28  ;;  %2463 = vmatprep.subr.bf16.mxu0 %v2616_v47  ;;  %v2658_v28 = vld [vmem:[%s2783_s11 + $0x19c] ss:$20 sps:$4 sm:$0xff]  }
  0x35   : > { %1110 = vmatmul.mubr.bf16.gmra.mxu0 %v2571_v27  ;;  %1206 = vmatmul.mubr.bf16.gmra.mxu1 %v2572_v29  ;;  %v2657_v27 = vld [vmem:[%s2783_s11 + $0x88] ss:$20 sps:$4 sm:$0xff]   ;;  %v2660_v29 = vld [vmem:[%s2783_s11 + $0xb0] ss:$20 sps:$4 sm:$0xff]  }
  0x36   : > { %2332 = vmatpush3.bf16.msra.mxu1 %v2574_v30  ;;  %1117 = vmatprep.mubr.bf16.mxu0 %v2577_v32  ;;  %v2661_v30 = vld [vmem:[%s2783_s11 + $0x198] ss:$20 sps:$4 sm:$0xff]  }
  0x37   : > { %2333 = vmatprep.subr.bf16.mxu1 %v2575_v31  ;;  %1213 = vmatprep.mubr.bf16.mxu1 %v2579_v33  ;;  %v2662_v31 = vld [vmem:[%s2783_s11 + $0xd8] ss:$20 sps:$4 sm:$0xff]   ;;  %v2665_v33 = vld [vmem:[%s2783_s11 + $0x100] ss:$20 sps:$4 sm:$0xff]  }
  0x38   : > { %2464 = vmatpush3.bf16.msra.mxu0 %v2616_v47  ;;  %v2663_v32 = vld [vmem:[%s2783_s11 + $0x1c4] ss:$20 sps:$4 sm:$0xff]  }
  0x39   : > { %2465 = vmatprep.subr.bf16.mxu0 %v2635_v56  ;;  %v2682_v47 = vld [vmem:[%s2783_s11 + $0x218] ss:$20 sps:$4 sm:$0xff]  }
  0x3a   : > { %2334 = vmatpush3.bf16.msra.mxu1 %v2576_v34  ;;  %v2666_v34 = vld [vmem:[%s2783_s11 + $0x1c0] ss:$20 sps:$4 sm:$0xff]  }
  0x3b   : > { %2335 = vmatprep.subr.bf16.mxu1 %v2583_v37  ;;  %v2670_v37 = vld [vmem:[%s2783_s11 + $0x150] ss:$20 sps:$4 sm:$0xff]  }
  0x3c   : > { %2466 = vmatpush3.bf16.msra.mxu0 %v2635_v56 }
  0x3d   : > { %1118 = vmatmul.mubr.bf16.gmra.mxu0 %v2581_v36  ;;  %1214 = vmatmul.mubr.bf16.gmra.mxu1 %v2582_v38  ;;  %v2668_v36 = vld [vmem:[%s2783_s11 + $0x1ec] ss:$20 sps:$4 sm:$0xff]   ;;  %v2671_v38 = vld [vmem:[%s2783_s11 + $0x1e8] ss:$20 sps:$4 sm:$0xff]  }
  0x3e   : > { %2336 = vmatpush3.bf16.msra.mxu1 %v2584_v39  ;;  %1125 = vmatprep.mubr.bf16.mxu0 %v2587_v41  ;;  %v2672_v39 = vld [vmem:[%s2783_s11 + $0x178] ss:$20 sps:$4 sm:$0xff]   ;;  %v2675_v41 = vld [vmem:[%s2783_s11 + $0x1a0] ss:$20 sps:$4 sm:$0xff]  }
  0x3f   : > { %2337 = vmatprep.subr.bf16.mxu1 %v2585_v40  ;;  %1221 = vmatprep.mubr.bf16.mxu1 %v2589_v42  ;;  %v2673_v40 = vld [vmem:[%s2783_s11 + $0x214] ss:$20 sps:$4 sm:$0xff]   ;;  %v2676_v42 = vld [vmem:[%s2783_s11 + $0x210] ss:$20 sps:$4 sm:$0xff]  }
  0x42   : > { %2338 = vmatpush3.bf16.msra.mxu1 %v2586_v43  ;;  %v2677_v43 = vld [vmem:[%s2783_s11 + $0x1c8] ss:$20 sps:$4 sm:$0xff]  }
  0x43   : > { %2339 = vmatprep.subr.bf16.mxu1 %v2593_v46  ;;  %v2681_v46 = vld [vmem:[%s2783_s11 + $0x238] ss:$20 sps:$4 sm:$0xff]  }
  0x45   : > { %1126 = vmatmul.mubr.bf16.gmra.mxu0 %v2591_v44  ;;  %1222 = vmatmul.mubr.bf16.gmra.mxu1 %v2592_v45  ;;  %v2678_v44 = vld [vmem:[%s2783_s11 + $0x23c] ss:$20 sps:$4 sm:$0xff]  }
  0x46   : > { %2340 = vmatpush3.bf16.msra.mxu1 %v2594_v48  ;;  %1133 = vmatprep.mubr.bf16.mxu0 %v2598_v50  ;;  %v2680_v45 = vld [vmem:[%s2783_s11 + $0x1f0] ss:$20 sps:$4 sm:$0xff]   ;;  %v2686_v50 = vld [vmem:[%s2783_s11 + $0x260] ss:$20 sps:$4 sm:$0xff]  }
  0x47   : > { %2341 = vmatprep.subr.bf16.mxu1 %v2595_v49  ;;  %1262 = vmatprep.mubr.bf16.mxu1 %v2602_v51  ;;  %v2683_v48 = vld [vmem:[%s2783_s11 + $0x264] ss:$20 sps:$4 sm:$0xff]   ;;  %v2685_v49 = vld [vmem:[%s2783_s11 + $0x240] ss:$20 sps:$4 sm:$0xff]   ;;  %v2687_v51 = vld [vmem:[%s2783_s11 + $0x268] ss:$20 sps:$4 sm:$0xff]  }
  0x4a   : > { %2342 = vmatpush3.bf16.msra.mxu1 %v2597_v52 }
  0x4d   : > { %1134 = vmatmul.mubr.bf16.gmra.mxu0 %v2603_v54  ;;  %1263 = vmatmul.mubr.bf16.vlgmr.msra.gmra.mxu1 %v2600_v53 }
  0x4e   : > { %1141 = vmatprep.mubr.bf16.mxu0 %v2604_v55  ;;  %1270 = vmatprep.mubr.bf16.mxu1 %v2606_v57 }
  0x55   : > { %1142 = vmatmul.mubr.bf16.gmra.mxu0 %v2608_v58  ;;  %1271 = vmatmul.mubr.bf16.gmra.mxu1 %v2609_v59 }
  0x56   : > { %1149 = vmatprep.mubr.bf16.mxu0 %v2610_v60  ;;  %1278 = vmatprep.mubr.bf16.mxu1 %v2612_v61 }
  0x5d   : > { %1150 = vmatmul.mubr.bf16.gmra.mxu0 %v2614_v62  ;;  %1279 = vmatmul.mubr.bf16.gmra.mxu1 %v2615_v63 }
  0x5e   : > { %1157 = vmatprep.mubr.bf16.mxu0 %v2617_v0  ;;  %1286 = vmatprep.mubr.bf16.mxu1 %v2619_v1 }
  0x65   : > { %1158 = vmatmul.mubr.bf16.gmra.mxu0 %v2621_v2  ;;  %1287 = vmatmul.mubr.bf16.gmra.mxu1 %v2622_v3 }
  0x66   : > { %1165 = vmatprep.mubr.bf16.mxu0 %v2623_v4  ;;  %1294 = vmatprep.mubr.bf16.mxu1 %v2625_v5 }
  0x6d   : > { %1166 = vmatmul.mubr.bf16.gmra.mxu0 %v2627_v6  ;;  %1295 = vmatmul.mubr.bf16.gmra.mxu1 %v2628_v7 }
  0x6e   : > { %1173 = vmatprep.mubr.bf16.mxu0 %v2629_v8  ;;  %1302 = vmatprep.mubr.bf16.mxu1 %v2631_v9 }
  0x75   : > { %1174 = vmatmul.mubr.bf16.gmra.mxu0 %v2633_v10  ;;  %1303 = vmatmul.mubr.bf16.gmra.mxu1 %v2634_v11 }
  0x76   : > { %1181 = vmatprep.mubr.bf16.mxu0 %v2636_v12  ;;  %1310 = vmatprep.mubr.bf16.mxu1 %v2638_v13 }
  0x7d   : > { %1182 = vmatmul.mubr.bf16.gmra.mxu0 %v2640_v14  ;;  %1311 = vmatmul.mubr.bf16.gmra.mxu1 %v2641_v15 }
  0x7e   : > { %1189 = vmatprep.mubr.bf16.mxu0 %v2642_v16  ;;  %1318 = vmatprep.mubr.bf16.mxu1 %v2644_v17 }
  0x85   : > { %1190 = vmatmul.mubr.bf16.gmra.mxu0 %v2646_v18  ;;  %1319 = vmatmul.mubr.bf16.gmra.mxu1 %v2647_v19 }
  0x86   : > { %1326 = vmatprep.mubr.bf16.mxu1 %v2648_v20  ;;  %2467 = vmatprep.mubr.msk.bf16.mxu0 %vm1020_vm0, %v2650_v21 }
  0x8d   : > { %1327 = vmatmul.mubr.bf16.gmra.mxu1 %v2651_v22  ;;  %2468 = vmatmul.mubr.msk.bf16.vlgmr.msra.gmra.mxu0 %vm1020_vm0, %v2652_v23 }
  0x8e   : > { %1334 = vmatprep.mubr.bf16.mxu1 %v2653_v24  ;;  %2471 = vmatprep.mubr.msk.bf16.mxu0 %vm1020_vm0, %v2655_v25 }
  0x95   : > { %1335 = vmatmul.mubr.bf16.gmra.mxu1 %v2656_v26  ;;  %2472 = vmatmul.mubr.msk.bf16.gmra.mxu0 %vm1020_vm0, %v2657_v27 }
  0x96   : > { %1342 = vmatprep.mubr.bf16.mxu1 %v2658_v28  ;;  %2475 = vmatprep.mubr.msk.bf16.mxu0 %vm1020_vm0, %v2660_v29 }
  0x9d   : > { %1343 = vmatmul.mubr.bf16.gmra.mxu1 %v2661_v30  ;;  %2476 = vmatmul.mubr.msk.bf16.gmra.mxu0 %vm1020_vm0, %v2662_v31 }
  0x9e   : > { %1350 = vmatprep.mubr.bf16.mxu1 %v2663_v32  ;;  %2479 = vmatprep.mubr.msk.bf16.mxu0 %vm1020_vm0, %v2665_v33 }
  0xa5   : > { %1351 = vmatmul.mubr.bf16.gmra.mxu1 %v2666_v34  ;;  %2480 = vmatmul.mubr.msk.bf16.gmra.mxu0 %vm1020_vm0, %v2667_v35 }
  0xa6   : > { %1358 = vmatprep.mubr.bf16.mxu1 %v2668_v36  ;;  %2483 = vmatprep.mubr.msk.bf16.mxu0 %vm1020_vm0, %v2670_v37 }
  0xad   : > { %1359 = vmatmul.mubr.bf16.gmra.mxu1 %v2671_v38  ;;  %2484 = vmatmul.mubr.msk.bf16.gmra.mxu0 %vm1020_vm0, %v2672_v39  ;;  %v2995_v38 = vld [vmem:[%s3274_s2] ss:$0 sm:$0xff] }
  0xae   : > { %1366 = vmatprep.mubr.bf16.mxu1 %v2673_v40  ;;  %2487 = vmatprep.mubr.msk.bf16.mxu0 %vm1020_vm0, %v2675_v41 }
  0xb5   : > { %1367 = vmatmul.mubr.bf16.gmra.mxu1 %v2676_v42  ;;  %2488 = vmatmul.mubr.msk.bf16.gmra.mxu0 %vm1020_vm0, %v2677_v43 }
  0xb6   : > { %1374 = vmatprep.mubr.bf16.mxu1 %v2678_v44  ;;  %2491 = vmatprep.mubr.msk.bf16.mxu0 %vm1020_vm0, %v2680_v45 }
  0xbd   : > { %1375 = vmatmul.mubr.bf16.gmra.mxu1 %v2681_v46  ;;  %2492 = vmatmul.mubr.msk.bf16.gmra.mxu0 %vm1020_vm0, %v2682_v47 }
  0xbe   : > { %1382 = vmatprep.mubr.bf16.mxu1 %v2683_v48  ;;  %2495 = vmatprep.mubr.msk.bf16.mxu0 %vm1020_vm0, %v2685_v49 }
  0xc5   : > { %1383 = vmatmul.mubr.bf16.gmra.mxu1 %v2686_v50  ;;  %2496 = vmatmul.mubr.msk.bf16.gmra.mxu0 %vm1020_vm0, %v2687_v51 }
  0xed   : > { %v2231_v52 = vpop.f32.mrf.mxu0  ;;  %v2303_v53 = vpop.f32.mrf.mxu1 }
  0xef   : > { %v2232_v54 = vpop.f32.mrf.mxu0  ;;  %v2304_v55 = vpop.f32.mrf.mxu1 }
  0xf0   : > { %v2233_v56 = vadd.f32 %v2232_v54, %v2231_v52  ;;  %v2962_v57 = vadd.f32 %v2304_v55, %v2303_v53 }
  0xf1   : > { %v2234_v58 = vpop.f32.mrf.mxu0  ;;  %v2306_v59 = vpop.f32.mrf.mxu1 }
  0xf2   : > { %3276 = vst [vmem:[#allocation2_spill] sm:$0xff] %v2962_v57  ;;  %v1104_v41 = vadd.f32 %v2233_v56, %v2995_v38 }
  0xf3   : > { %v2235_v60 = vpop.f32.mrf.mxu0  ;;  %v2307_v61 = vpop.f32.mrf.mxu1 }
  0xf4   : > { %v2964_v62 = vadd.f32 %v2235_v60, %v2234_v58  ;;  %v2966_v63 = vadd.f32 %v2307_v61, %v2306_v59 }
  0xf5   : > { %v2237_v0 = vpop.f32.mrf.mxu0  ;;  %v2309_v1 = vpop.f32.mrf.mxu1 }
  0xf6   : > { %3277 = vst [vmem:[#allocation3_spill] sm:$0xff] %v2966_v63 }
  0xf7   : > { %v2238_v2 = vpop.f32.mrf.mxu0  ;;  %v2310_v3 = vpop.f32.mrf.mxu1 }
  0xf8   : > { %v2968_v4 = vadd.f32 %v2238_v2, %v2237_v0  ;;  %v2970_v5 = vadd.f32 %v2310_v3, %v2309_v1 }
  0xf9   : > { %v2240_v6 = vpop.f32.mrf.mxu0  ;;  %v2312_v7 = vpop.f32.mrf.mxu1 }
  0xfa   : > { %3278 = vst [vmem:[#allocation4_spill] sm:$0xff] %v2970_v5 }
  0xfb   : > { %v2241_v8 = vpop.f32.mrf.mxu0  ;;  %v2313_v9 = vpop.f32.mrf.mxu1 }
  0xfc   : > { %v2972_v10 = vadd.f32 %v2241_v8, %v2240_v6  ;;  %v2974_v11 = vadd.f32 %v2313_v9, %v2312_v7 }
  0xfd   : > { %v2243_v12 = vpop.f32.mrf.mxu0  ;;  %v2315_v13 = vpop.f32.mrf.mxu1 }
  0xfe   : > { %3279 = vst [vmem:[#allocation5_spill] sm:$0xff] %v2974_v11 }
  0xff   : > { %v2244_v14 = vpop.f32.mrf.mxu0  ;;  %v2316_v15 = vpop.f32.mrf.mxu1 }
 0x100   : > { %v2976_v16 = vadd.f32 %v2244_v14, %v2243_v12  ;;  %v2978_v17 = vadd.f32 %v2316_v15, %v2315_v13 }
 0x101   : > { %v2246_v18 = vpop.f32.mrf.mxu0  ;;  %v2318_v19 = vpop.f32.mrf.mxu1 }
 0x102   : > { %3280 = vst [vmem:[#allocation6_spill] sm:$0xff] %v2978_v17 }
 0x103   : > { %v2247_v20 = vpop.f32.mrf.mxu0  ;;  %v2319_v21 = vpop.f32.mrf.mxu1 }
 0x104   : > { %v2980_v22 = vadd.f32 %v2247_v20, %v2246_v18  ;;  %v2982_v23 = vadd.f32 %v2319_v21, %v2318_v19 }
 0x105   : > { %v2249_v24 = vpop.f32.mrf.mxu0  ;;  %v2321_v25 = vpop.f32.mrf.mxu1 }
 0x106   : > { %3281 = vst [vmem:[#allocation7_spill] sm:$0xff] %v2982_v23 }
 0x107   : > { %v2250_v26 = vpop.f32.mrf.mxu0  ;;  %v2322_v27 = vpop.f32.mrf.mxu1 }
 0x108   : > { %v2984_v28 = vadd.f32 %v2250_v26, %v2249_v24  ;;  %v2986_v29 = vadd.f32 %v2322_v27, %v2321_v25 }
 0x109   : > { %v2252_v30 = vpop.f32.mrf.mxu0  ;;  %v2324_v31 = vpop.f32.mrf.mxu1 }
 0x10a   : > { %3282 = vst [vmem:[#allocation8_spill] sm:$0xff] %v2986_v29 }
 0x10b   : > { %v2253_v32 = vpop.f32.mrf.mxu0  ;;  %v2325_v33 = vpop.f32.mrf.mxu1 }
 0x10c   : > { %v2988_v34 = vadd.f32 %v2253_v32, %v2252_v30  ;;  %v2990_v35 = vadd.f32 %v2325_v33, %v2324_v31 }
 0x10d   : > { %v2255_v36 = vpop.f32.mrf.mxu0  ;;  %v2343_v37 = vpop.f32.mrf.mxu1 }
 0x10e   : > { %3283 = vst [vmem:[#allocation9_spill] sm:$0xff] %v2990_v35 }
 0x10f   : > { %v2256_v39 = vpop.f32.mrf.mxu0  ;;  %v2344_v40 = vpop.f32.mrf.mxu1 }
 0x110   : > { %v2998_v42 = vadd.f32 %v2256_v39, %v2255_v36  ;;  %v2345_v43 = vadd.f32 %v2344_v40, %v2343_v37 }
 0x111   : > { %v2258_v44 = vpop.f32.mrf.mxu0  ;;  %v3000_v45 = vpop.f32.mrf.mxu1 }
 0x112   : > { %v3002_v46 = vadd.f32 %v2345_v43, %v1104_v41 }
 0x113   : > { %v2259_v47 = vpop.f32.mrf.mxu0  ;;  %v3004_v48 = vpop.f32.mrf.mxu1 }
 0x114   : > { %v3006_v49 = vadd.f32 %v2259_v47, %v2258_v44 }
 0x115   : > { %v2261_v50 = vpop.f32.mrf.mxu0  ;;  %v2349_v51 = vpop.f32.mrf.mxu1 }
 0x117   : > { %v2262_v52 = vpop.f32.mrf.mxu0  ;;  %v2350_v53 = vpop.f32.mrf.mxu1 }
 0x118   : > { %v3008_v54 = vadd.f32 %v2262_v52, %v2261_v50  ;;  %v2351_v11 = vadd.f32 %v2350_v53, %v2349_v51  ;;  %v2348_v53 = vadd.f32 %v3004_v48, %v3000_v45  ;;  %v1128_v48 = vadd.f32 %v2984_v28, %v2995_v38 }
 0x119   : > { %v2264_v55 = vpop.f32.mrf.mxu0  ;;  %v2352_v56 = vpop.f32.mrf.mxu1 }
 0x11b   : > { %v2265_v58 = vpop.f32.mrf.mxu0  ;;  %v2353_v59 = vpop.f32.mrf.mxu1 }
 0x11c   : > { %v3010_v60 = vadd.f32 %v2265_v58, %v2264_v55 }
 0x11d   : > { %v2267_v61 = vpop.f32.mrf.mxu0  ;;  %v2355_v0 = vpop.f32.mrf.mxu1 }
 0x11f   : > { %v2268_v1 = vpop.f32.mrf.mxu0  ;;  %v2356_v2 = vpop.f32.mrf.mxu1 }
 0x120   : > { %v3012_v3 = vadd.f32 %v2268_v1, %v2267_v61 }
 0x121   : > { %v2270_v6 = vpop.f32.mrf.mxu0  ;;  %v3014_v7 = vpop.f32.mrf.mxu1 }
 0x123   : > { %v2271_v8 = vpop.f32.mrf.mxu0  ;;  %v3016_v9 = vpop.f32.mrf.mxu1 }
 0x124   : > { %v3018_v12 = vadd.f32 %v2271_v8, %v2270_v6 }
 0x125   : > { %v3020_v13 = vpop.f32.mrf.mxu0  ;;  %v2361_v14 = vpop.f32.mrf.mxu1 }
 0x127   : > { %v3022_v15 = vpop.f32.mrf.mxu0  ;;  %v2362_v18 = vpop.f32.mrf.mxu1 }
 0x128   : > { %v2275_v28 = vadd.f32 %v3022_v15, %v3020_v13 }
 0x129   : > { %v3024_v19 = vpop.f32.mrf.mxu0  ;;  %v3026_v20 = vpop.f32.mrf.mxu1 }
 0x12b   : > { %v3028_v21 = vpop.f32.mrf.mxu0  ;;  %v3030_v24 = vpop.f32.mrf.mxu1 }
 0x12d   : > { %v3032_v25 = vpop.f32.mrf.mxu0  ;;  %v3034_v26 = vpop.f32.mrf.mxu1 }
 0x12f   : > { %v3036_v27 = vpop.f32.mrf.mxu0  ;;  %v3038_v30 = vpop.f32.mrf.mxu1 }
 0x131   : > { %v3040_v31 = vpop.f32.mrf.mxu0  ;;  %v3042_v32 = vpop.f32.mrf.mxu1 }
 0x132   : > { %3284 = vst [vmem:[#allocation10_spill] sm:$0xff] %v3040_v31 }
 0x133   : > { %v3044_v33 = vpop.f32.mrf.mxu0  ;;  %v3046_v36 = vpop.f32.mrf.mxu1 }
 0x134   : > { %3285 = vst [vmem:[#allocation11_spill] sm:$0xff] %v3044_v33 }
 0x135   : > { %v3048_v37 = vpop.f32.mrf.mxu0  ;;  %v3050_v39 = vpop.f32.mrf.mxu1 }
 0x137   : > { %v3052_v40 = vpop.f32.mrf.mxu0  ;;  %v2374_v41 = vpop.f32.mrf.mxu1 }
 0x139   : > { %v3054_v43 = vpop.f32.mrf.mxu0  ;;  %v3056_v44 = vpop.f32.mrf.mxu1 }
 0x13b   : > { %v3058_v47 = vpop.f32.mrf.mxu0  ;;  %v3060_v50 = vpop.f32.mrf.mxu1 }
 0x13d   : > { %v3062_v52 = vpop.f32.mrf.mxu0  ;;  %v3064_v55 = vpop.f32.mrf.mxu1 }
 0x13e   : > { %3286 = vst [vmem:[#allocation12_spill] sm:$0xff] %v3062_v52  ;;  %v2354_v52 = vadd.f32 %v2353_v59, %v2352_v56  ;;  %v1123_v59 = vadd.f32 %v2980_v22, %v2995_v38 }
 0x13f   : > { %v3066_v58 = vpop.f32.mrf.mxu0  ;;  %v3068_v61 = vpop.f32.mrf.mxu1 }
 0x140   : > { %3287 = vst [vmem:[#allocation13_spill] sm:$0xff] %v3066_v58 }
 0x141   : > { %v3070_v1 = vpop.f32.mrf.mxu0  ;;  %v3072_v6 = vpop.f32.mrf.mxu1 }
 0x142   : > { %3288 = vst [vmem:[#allocation14_spill] sm:$0xff] %v3070_v1  ;;  %v1112_v1 = vadd.f32 %v2968_v4, %v2995_v38 }
 0x143   : > { %v3074_v8 = vpop.f32.mrf.mxu0  ;;  %v3076_v35 = vpop.f32.mrf.mxu1 }
 0x144   : > { %3289 = vst [vmem:[#allocation15_spill] sm:$0xff] %v3074_v8  ;;  %3290 = vst [vmem:[#allocation16_spill] sm:$0xff] %v3076_v35 }
 0x145   : > { %v3078_v29 = vpop.f32.mrf.mxu0  ;;  %v3080_v23 = vpop.f32.mrf.mxu1 }
 0x146   : > { %3291 = vst [vmem:[#allocation17_spill] sm:$0xff] %v3078_v29  ;;  %v1273_v29 = vadd.f32 %v2351_v11, %v1112_v1  ;;  %v1120_v11 = vadd.f32 %v2976_v16, %v2995_v38  ;;  %v3119_v16 = vadd.f32 %v2998_v42, %v2995_v38 }
 0x147   : > { %v3082_v17 = vpop.f32.mrf.mxu0  ;;  %v3084_v63 = vpop.f32.mrf.mxu1 }
 0x148   : > { %3292 = vst [vmem:[#allocation18_spill] sm:$0xff] %v3082_v17  ;;  %v1115_v17 = vadd.f32 %v2972_v10, %v2995_v38  ;;  %v2363_v10 = vadd.f32 %v2362_v18, %v2361_v14  ;;  %v2360_v18 = vadd.f32 %v3016_v9, %v3014_v7 }
 0x149   : > { %v3086_v57 = vpop.f32.mrf.mxu0  ;;  %v3088_v5 = vpop.f32.mrf.mxu1 }
 0x14a   : > { %3293 = vst [vmem:[#allocation19_spill] sm:$0xff] %v3086_v57  ;;  %v2357_v57 = vadd.f32 %v2356_v2, %v2355_v0  ;;  %v1276_v56 = vadd.f32 %v2354_v52, %v1115_v17  ;;  %v1131_v0 = vadd.f32 %v2988_v34, %v2995_v38  ;;  %v2366_v52 = vadd.f32 %v3030_v24, %v3026_v20 }
 0x14b   : > { %v3092_v58 = vpop.f32.mrf.mxu0  ;;  %v3094_v8 = vpop.f32.mrf.mxu1 }
 0x14c   : > { %3294 = vst [vmem:[#allocation20_spill] sm:$0xff] %v3092_v58  ;;  %v1107_v58 = vadd.f32 %v2964_v62, %v2995_v38  ;;  %v1281_v14 = vadd.f32 %v2357_v57, %v1120_v11  ;;  %v3149_v11 = vadd.f32 %v3012_v3, %v2995_v38  ;;  %v2369_v3 = vadd.f32 %v3038_v30, %v3034_v26 }
 0x14d   : > { %v3096_v33 = vpop.f32.mrf.mxu1  ;;  %v2469_v31 = vpop.f32.mrf.mxu0 }
 0x14e   : > { %v1434_v51 = vadd.f32 %v2469_v31, %v1273_v29 }
 0x14f   : > { %v3102_v35 = vpop.f32.mrf.mxu1  ;;  %v1425_v4 = vpop.f32.mrf.mxu0 }
 0x150   : > { %v1426_v29 = vadd.f32 %v1425_v4, %v3002_v46  ;;  %v1586_v62 = vmul.f32 0.2, %v1434_v51  ;;  %vm1554_vm1 = vcmp.ge.f32.partialorder %v1434_v51, 0.0  ;;  %v1268_v46 = vadd.f32 %v2348_v53, %v1107_v58 }
 0x151   : > { %v3111_v31 = vpop.f32.mrf.mxu1  ;;  %v2470_v45 = vpop.f32.mrf.mxu0  ;;  %v2375_v58 = vadd.f32 %v2374_v41, %v3050_v39  ;;  %v1139_v39 = vadd.f32 %v3006_v49, %v2995_v38  ;;  %v1144_v41 = vadd.f32 %v3008_v54, %v2995_v38  ;;  %v3156_v49 = vadd.f32 %v3018_v12, %v2995_v38 }
 0x152   : > { %v1437_v17 = vadd.f32 %v2470_v45, %v1276_v56  ;;  %v1584_v42 = vmul.f32 0.2, %v1426_v29  ;;  %v1289_v56 = vadd.f32 %v2363_v10, %v1128_v48  ;;  %v1618_v57 = vsel %vm1554_vm1, %v1434_v51, %v1586_v62 }
 0x153   : > { %v3122_v22 = vpop.f32.mrf.mxu1  ;;  %v1428_v2 = vpop.f32.mrf.mxu0  ;;  %vm1552_vm3 = vcmp.ge.f32.partialorder %v1426_v29, 0.0  ;;  %v1147_v51 = vadd.f32 %v3010_v60, %v2995_v38  ;;  %v1160_v54 = vadd.f32 %v2275_v28, %v2995_v38  ;;  %v2278_v28 = vadd.f32 %v3028_v21, %v3024_v19 }
 0x154   : > { %vm1555_vm2 = vcmp.ge.f32.partialorder %v1437_v17, 0.0  ;;  %v1587_v34 = vmul.f32 0.2, %v1437_v17  ;;  %v1429_v1 = vadd.f32 %v1428_v2, %v1268_v46  ;;  %v1616_v10 = vsel %vm1552_vm3, %v1426_v29, %v1584_v42 }
 0x155   : > { %v3130_v4 = vpop.f32.mrf.mxu1  ;;  %v2473_v45 = vpop.f32.mrf.mxu0  ;;  %v1284_v2 = vadd.f32 %v2360_v18, %v1123_v59  ;;  %v2372_v18 = vadd.f32 %v3046_v36, %v3042_v32  ;;  %v1297_v19 = vadd.f32 %v2369_v3, %v3119_v16  ;;  %v1163_v32 = vadd.f32 %v2278_v28, %v2995_v38 }
 0x156   : > { %v1619_v7 = vsel %vm1555_vm2, %v1437_v17, %v1587_v34  ;;  %vm1553_vm4 = vcmp.ge.f32.partialorder %v1429_v1, 0.0  ;;  %v1585_v13 = vmul.f32 0.2, %v1429_v1  ;;  %v1450_v15 = vadd.f32 %v2473_v45, %v1289_v56 }
 0x157   : > { %v2128_v9 = vpack.c.bf16 %v1619_v7, %v1618_v57  ;;  %v3139_v20 = vpop.f32.mrf.mxu1  ;;  %v1441_v24 = vpop.f32.mrf.mxu0  ;;  %v1292_v17 = vadd.f32 %v2366_v52, %v1131_v0  ;;  %v2378_v0 = vadd.f32 %v3060_v50, %v3056_v44  ;;  %v2387_v44 = vadd.f32 %v3084_v63, %v3080_v23 }
 0x158   : > { %v1442_v53 = vadd.f32 %v1441_v24, %v1281_v14  ;;  %v1617_v48 = vsel %vm1553_vm4, %v1429_v1, %v1585_v13  ;;  %v1590_v14 = vmul.f32 0.2, %v1450_v15  ;;  %v1305_v1 = vadd.f32 %v2375_v58, %v1144_v41 }
 0x159   : > { %2200 = vst [vmem:[%s3137_s29 + $0x8] sm:$0xff] %v2128_v9   ;;  %v3152_v62 = vpop.f32.mrf.mxu1  ;;  %v2474_v46 = vpop.f32.mrf.mxu0  ;;  %v2123_v60 = vpack.c.bf16 %v1617_v48, %v1616_v10  ;;  %vm1558_vm5 = vcmp.ge.f32.partialorder %v1450_v15, 0.0  ;;  %v1308_v24 = vadd.f32 %v2378_v0, %v1147_v51  ;;  %v2281_v23 = vadd.f32 %v3036_v27, %v3032_v25  ;;  %v3296_v0 = vld [vmem:[#allocation10_spill] sm:$0xff] }
 0x15a   : > { %v1453_v29 = vadd.f32 %v2474_v46, %v1292_v17  ;;  %v1588_v12 = vmul.f32 0.2, %v1442_v53  ;;  %vm1556_vm6 = vcmp.ge.f32.partialorder %v1442_v53, 0.0  ;;  %v1622_v50 = vsel %vm1558_vm5, %v1450_v15, %v1590_v14 }
 0x15b   : > { %v3161_v34 = vpop.f32.mrf.mxu1  ;;  %v1444_v42 = vpop.f32.mrf.mxu0  ;;  %2124 = vst [vmem:[%s3137_s29] sm:$0xff] %v2123_v60   ;;  %v1300_v15 = vadd.f32 %v2372_v18, %v1139_v39  ;;  %v2381_v51 = vadd.f32 %v3068_v61, %v3064_v55  ;;  %v2390_v17 = vadd.f32 %v3094_v8, %v3088_v5  ;;  %v2290_v39 = vadd.f32 %v3058_v47, %v3054_v43 }
 0x15c   : > { %v1445_v52 = vadd.f32 %v1444_v42, %v1284_v2  ;;  %vm1559_vm7 = vcmp.ge.f32.partialorder %v1453_v29, 0.0  ;;  %v1591_v59 = vmul.f32 0.2, %v1453_v29  ;;  %v1620_v7 = vsel %vm1556_vm6, %v1442_v53, %v1588_v12  ;;  %v3297_v12 = vld [vmem:[#allocation11_spill] sm:$0xff] }
 0x15d   : > { %v3168_v26 = vpop.f32.mrf.mxu1  ;;  %v2477_v30 = vpop.f32.mrf.mxu0  ;;  %v2287_v53 = vadd.f32 %v3052_v40, %v3048_v37  ;;  %v1321_v2 = vadd.f32 %v2387_v44, %v1160_v54  ;;  %v3295_v37 = vld [vmem:[#allocation16_spill] sm:$0xff]  ;;  %v2399_v42 = vadd.f32 %v3139_v20, %v3130_v4  ;;  %v1313_v47 = vadd.f32 %v2381_v51, %v3149_v11 }
 0x15e   : > { %vm1557_vm8 = vcmp.ge.f32.partialorder %v1445_v52, 0.0  ;;  %v1589_v56 = vmul.f32 0.2, %v1445_v52  ;;  %v1466_v45 = vadd.f32 %v2477_v30, %v1305_v1  ;;  %v1623_v58 = vsel %vm1559_vm7, %v1453_v29, %v1591_v59 }
 0x15f   : > { %v3174_v57 = vpop.f32.mrf.mxu1  ;;  %v1457_v21 = vpop.f32.mrf.mxu0  ;;  %v2138_v9 = vpack.c.bf16 %v1623_v58, %v1622_v50  ;;  %v2384_v40 = vadd.f32 %v3295_v37, %v3072_v6  ;;  %v1168_v29 = vadd.f32 %v2281_v23, %v2995_v38  ;;  %v1324_v30 = vadd.f32 %v2390_v17, %v1163_v32  ;;  %v3300_v23 = vld [vmem:[#allocation12_spill] sm:$0xff] }
 0x160   : > { %v1621_v13 = vsel %vm1557_vm8, %v1445_v52, %v1589_v56  ;;  %v1594_v41 = vmul.f32 0.2, %v1466_v45  ;;  %v1458_v10 = vadd.f32 %v1457_v21, %v1297_v19  ;;  %vm1562_vm9 = vcmp.ge.f32.partialorder %v1466_v45, 0.0  ;;  %v3298_v19 = vld [vmem:[#allocation17_spill] sm:$0xff]  ;;  %v3299_v21 = vld [vmem:[#allocation18_spill] sm:$0xff] }
 0x161   : > { %v2133_v36 = vpack.c.bf16 %v1621_v13, %v1620_v7  ;;  %v3178_v48 = vpop.f32.mrf.mxu1  ;;  %v2478_v63 = vpop.f32.mrf.mxu0  ;;  %2202 = vst [vmem:[%s3137_s29 + $0x18] sm:$0xff] %v2138_v9   ;;  %v2284_v52 = vadd.f32 %v3297_v12, %v3296_v0  ;;  %v1176_v18 = vadd.f32 %v2287_v53, %v2995_v38  ;;  %v1179_v20 = vadd.f32 %v2290_v39, %v2995_v38 }
 0x162   : > { %v1469_v16 = vadd.f32 %v2478_v63, %v1308_v24  ;;  %v1592_v3 = vmul.f32 0.2, %v1458_v10  ;;  %v1626_v55 = vsel %vm1562_vm9, %v1466_v45, %v1594_v41  ;;  %vm1560_vm11 = vcmp.ge.f32.partialorder %v1458_v10, 0.0 }
 0x163   : > { %2201 = vst [vmem:[%s3137_s29 + $0x10] sm:$0xff] %v2133_v36   ;;  %v3190_v46 = vpop.f32.mrf.mxu1  ;;  %v1460_v60 = vpop.f32.mrf.mxu0  ;;  %v1316_v58 = vadd.f32 %v2384_v40, %v3156_v49  ;;  %v2299_v7 = vadd.f32 %v3299_v21, %v3298_v19  ;;  %v2393_v9 = vadd.f32 %v3102_v35, %v3096_v33  ;;  %v2402_v13 = vadd.f32 %v3161_v34, %v3152_v62  ;;  %v3302_v40 = vld [vmem:[#allocation19_spill] sm:$0xff] }
 0x164   : > { %vm1563_vm10 = vcmp.ge.f32.partialorder %v1469_v16, 0.0  ;;  %v1595_v25 = vmul.f32 0.2, %v1469_v16  ;;  %v1461_v27 = vadd.f32 %v1460_v60, %v1300_v15  ;;  %v1624_v28 = vsel %vm1560_vm11, %v1458_v10, %v1592_v3 }
 0x165   : > { %v2409_v61 = vpop.f32.mrf.mxu1  ;;  %v2481_v5 = vpop.f32.mrf.mxu0  ;;  %v1337_v36 = vadd.f32 %v2399_v42, %v1176_v18  ;;  %v2396_v15 = vadd.f32 %v3122_v22, %v3111_v31  ;;  %v1171_v17 = vadd.f32 %v2284_v52, %v2995_v38  ;;  %v1192_v31 = vadd.f32 %v2299_v7, %v2995_v38 }
 0x166   : > { %v1627_v8 = vsel %vm1563_vm10, %v1469_v16, %v1595_v25  ;;  %vm1561_vm12 = vcmp.ge.f32.partialorder %v1461_v27, 0.0  ;;  %v1593_v14 = vmul.f32 0.2, %v1461_v27  ;;  %v1482_v54 = vadd.f32 %v2481_v5, %v1321_v2  ;;  %v3301_v16 = vld [vmem:[#allocation13_spill] sm:$0xff] }
 0x167   : > { %v2148_v1 = vpack.c.bf16 %v1627_v8, %v1626_v55  ;;  %v2410_v43 = vpop.f32.mrf.mxu1  ;;  %v1473_v6 = vpop.f32.mrf.mxu0  ;;  %v2293_v49 = vadd.f32 %v3301_v16, %v3300_v23  ;;  %v1329_v25 = vadd.f32 %v2393_v9, %v1168_v29  ;;  %v1340_v37 = vadd.f32 %v2402_v13, %v1179_v20  ;;  %v3303_v55 = vld [vmem:[#allocation20_spill] sm:$0xff] }
 0x168   : > { %v1625_v59 = vsel %vm1561_vm12, %v1461_v27, %v1593_v14  ;;  %v1598_v45 = vmul.f32 0.2, %v1482_v54  ;;  %v1474_v44 = vadd.f32 %v1473_v6, %v1313_v47  ;;  %vm1566_vm13 = vcmp.ge.f32.partialorder %v1482_v54, 0.0  ;;  %v3304_v47 = vld [vmem:[#allocation14_spill] sm:$0xff]  ;;  %v3305_v6 = vld [vmem:[#allocation15_spill] sm:$0xff] }
 0x169   : > { %2204 = vst [vmem:[%s3137_s29 + $0x28] sm:$0xff] %v2148_v1   ;;  %v2143_v56 = vpack.c.bf16 %v1625_v59, %v1624_v28  ;;  %v2412_v50 = vpop.f32.mrf.mxu1  ;;  %v2482_v4 = vpop.f32.mrf.mxu0  ;;  %v2411_v60 = vadd.f32 %v2410_v43, %v2409_v61  ;;  %v2302_v5 = vadd.f32 %v3303_v55, %v3302_v40  ;;  %v1184_v61 = vadd.f32 %v2293_v49, %v2995_v38 }
 0x16a   : > { %v1485_v11 = vadd.f32 %v2482_v4, %v1324_v30  ;;  %v1596_v41 = vmul.f32 0.2, %v1474_v44  ;;  %v1630_v53 = vsel %vm1566_vm13, %v1482_v54, %v1598_v45  ;;  %vm1564_vm15 = vcmp.ge.f32.partialorder %v1474_v44, 0.0 }
 0x16b   : > { %2203 = vst [vmem:[%s3137_s29 + $0x20] sm:$0xff] %v2143_v56   ;;  %v2413_v24 = vpop.f32.mrf.mxu1  ;;  %v1476_v32 = vpop.f32.mrf.mxu0  ;;  %v1332_v43 = vadd.f32 %v2396_v15, %v1171_v17  ;;  %v2296_v0 = vadd.f32 %v3305_v6, %v3304_v47  ;;  %v2405_v12 = vadd.f32 %v3174_v57, %v3168_v26  ;;  %v1353_v30 = vadd.f32 %v2411_v60, %v1192_v31 }
 0x16c   : > { %vm1567_vm14 = vcmp.ge.f32.partialorder %v1485_v11, 0.0  ;;  %v1599_v10 = vmul.f32 0.2, %v1485_v11  ;;  %v1477_v63 = vadd.f32 %v1476_v32, %v1316_v58  ;;  %v1628_v22 = vsel %vm1564_vm15, %v1474_v44, %v1596_v41 }
 0x16d   : > { %v3219_v35 = vpop.f32.mrf.mxu1  ;;  %v2485_v33 = vpop.f32.mrf.mxu0  ;;  %v2414_v52 = vadd.f32 %v2413_v24, %v2412_v50  ;;  %v1195_v44 = vadd.f32 %v2302_v5, %v2995_v38  ;;  %v2408_v4 = vadd.f32 %v3190_v46, %v3178_v48  ;;  %v1187_v19 = vadd.f32 %v2296_v0, %v2995_v38 }
 0x16e   : > { %v1631_v62 = vsel %vm1567_vm14, %v1485_v11, %v1599_v10  ;;  %vm1565_vm0 = vcmp.ge.f32.partialorder %v1477_v63, 0.0  ;;  %v1597_v34 = vmul.f32 0.2, %v1477_v63  ;;  %v1498_v51 = vadd.f32 %v2485_v33, %v1337_v36  ;;  %v3306_v36 = vld [vmem:[#allocation4_spill] sm:$0xff]  ;;  %v3307_v33 = vld [vmem:[#allocation2_spill] sm:$0xff] }
 0x16f   : > { %v2158_v2 = vpack.c.bf16 %v1631_v62, %v1630_v53  ;;  %v2416_v3 = vpop.f32.mrf.mxu1  ;;  %v1489_v27 = vpop.f32.mrf.mxu0  ;;  %v1345_v9 = vadd.f32 %v2405_v12, %v1184_v61  ;;  %v1356_v46 = vadd.f32 %v2414_v52, %v1195_v44  ;;  %v1208_v41 = vadd.f32 %v3306_v36, %v2995_v38 }
 0x170   : > { %v1629_v39 = vsel %vm1565_vm0, %v1477_v63, %v1597_v34  ;;  %v1602_v14 = vmul.f32 0.2, %v1498_v51  ;;  %v1490_v54 = vadd.f32 %v1489_v27, %v1329_v25  ;;  %vm1570_vm1 = vcmp.ge.f32.partialorder %v1498_v51, 0.0 }
 0x171   : > { %2206 = vst [vmem:[%s3137_s29 + $0x38] sm:$0xff] %v2158_v2   ;;  %v2153_v8 = vpack.c.bf16 %v1629_v39, %v1628_v22  ;;  %v2418_v42 = vpop.f32.mrf.mxu1  ;;  %v2486_v1 = vpop.f32.mrf.mxu0  ;;  %v1348_v53 = vadd.f32 %v2408_v4, %v1187_v19  ;;  %v1200_v62 = vadd.f32 %v3307_v33, %v2995_v38  ;;  %v2417_v34 = vadd.f32 %v2416_v3, %v3219_v35  ;;  %v3308_v22 = vld [vmem:[#allocation5_spill] sm:$0xff] }
 0x172   : > { %v1501_v29 = vadd.f32 %v2486_v1, %v1340_v37  ;;  %v1600_v18 = vmul.f32 0.2, %v1490_v54  ;;  %v1634_v20 = vsel %vm1570_vm1, %v1498_v51, %v1602_v14  ;;  %vm1568_vm3 = vcmp.ge.f32.partialorder %v1490_v54, 0.0 }
 0x173   : > { %2205 = vst [vmem:[%s3137_s29 + $0x30] sm:$0xff] %v2153_v8   ;;  %v2419_v28 = vpop.f32.mrf.mxu1  ;;  %v1492_v59 = vpop.f32.mrf.mxu0  ;;  %v1211_v39 = vadd.f32 %v3308_v22, %v2995_v38  ;;  %v1361_v1 = vadd.f32 %v2417_v34, %v1200_v62 }
 0x174   : > { %vm1571_vm2 = vcmp.ge.f32.partialorder %v1501_v29, 0.0  ;;  %v1603_v56 = vmul.f32 0.2, %v1501_v29  ;;  %v1493_v45 = vadd.f32 %v1492_v59, %v1332_v43  ;;  %v1632_v24 = vsel %vm1568_vm3, %v1490_v54, %v1600_v18 }
 0x175   : > { %v2421_v11 = vpop.f32.mrf.mxu1  ;;  %v2489_v26 = vpop.f32.mrf.mxu0  ;;  %v2420_v37 = vadd.f32 %v2419_v28, %v2418_v42 }
 0x176   : > { %v1635_v57 = vsel %vm1571_vm2, %v1501_v29, %v1603_v56  ;;  %vm1569_vm4 = vcmp.ge.f32.partialorder %v1493_v45, 0.0  ;;  %v1601_v50 = vmul.f32 0.2, %v1493_v45  ;;  %v1514_v58 = vadd.f32 %v2489_v26, %v1353_v30  ;;  %v3309_v29 = vld [vmem:[#allocation3_spill] sm:$0xff]  ;;  %v3310_v26 = vld [vmem:[#allocation6_spill] sm:$0xff] }
 0x177   : > { %v2168_v21 = vpack.c.bf16 %v1635_v57, %v1634_v20  ;;  %v2422_v7 = vpop.f32.mrf.mxu1  ;;  %v1505_v13 = vpop.f32.mrf.mxu0  ;;  %v1203_v43 = vadd.f32 %v3309_v29, %v2995_v38  ;;  %v1216_v57 = vadd.f32 %v3310_v26, %v2995_v38 }
 0x178   : > { %v1633_v32 = vsel %vm1569_vm4, %v1493_v45, %v1601_v50  ;;  %v2423_v48 = vadd.f32 %v2422_v7, %v2421_v11  ;;  %v1606_v63 = vmul.f32 0.2, %v1514_v58  ;;  %v1506_v23 = vadd.f32 %v1505_v13, %v1345_v9  ;;  %v3311_v13 = vld [vmem:[#allocation7_spill] sm:$0xff] }
 0x179   : > { %2208 = vst [vmem:[%s3137_s29 + $0x48] sm:$0xff] %v2168_v21   ;;  %v2163_v10 = vpack.c.bf16 %v1633_v32, %v1632_v24  ;;  %v2424_v16 = vpop.f32.mrf.mxu1  ;;  %v2490_v49 = vpop.f32.mrf.mxu0  ;;  %vm1574_vm5 = vcmp.ge.f32.partialorder %v1514_v58, 0.0  ;;  %v1364_v18 = vadd.f32 %v2420_v37, %v1203_v43  ;;  %v1219_v24 = vadd.f32 %v3311_v13, %v2995_v38 }
 0x17a   : > { %v1517_v15 = vadd.f32 %v2490_v49, %v1356_v46  ;;  %v1604_v51 = vmul.f32 0.2, %v1506_v23  ;;  %v1369_v2 = vadd.f32 %v2423_v48, %v1208_v41  ;;  %v1638_v40 = vsel %vm1574_vm5, %v1514_v58, %v1606_v63  ;;  %v3312_v41 = vld [vmem:[#allocation8_spill] sm:$0xff] }
 0x17b   : > { %2207 = vst [vmem:[%s3137_s29 + $0x40] sm:$0xff] %v2163_v10   ;;  %v2425_v17 = vpop.f32.mrf.mxu1  ;;  %v1508_v60 = vpop.f32.mrf.mxu0  ;;  %vm1572_vm7 = vcmp.ge.f32.partialorder %v1506_v23, 0.0  ;;  %v1224_v10 = vadd.f32 %v3312_v41, %v2995_v38 }
 0x17c   : > { %vm1575_vm6 = vcmp.ge.f32.partialorder %v1517_v15, 0.0  ;;  %v1607_v25 = vmul.f32 0.2, %v1517_v15  ;;  %v2426_v27 = vadd.f32 %v2425_v17, %v2424_v16  ;;  %v1509_v31 = vadd.f32 %v1508_v60, %v1348_v53  ;;  %v3313_v60 = vld [vmem:[#allocation9_spill] sm:$0xff] }
 0x17d   : > { %v2427_v55 = vpop.f32.mrf.mxu1  ;;  %v2493_v5 = vpop.f32.mrf.mxu0  ;;  %v1636_v47 = vsel %vm1572_vm7, %v1506_v23, %v1604_v51 }
 0x17e   : > { %v1639_v35 = vsel %vm1575_vm6, %v1517_v15, %v1607_v25  ;;  %vm1573_vm8 = vcmp.ge.f32.partialorder %v1509_v31, 0.0  ;;  %v1605_v3 = vmul.f32 0.2, %v1509_v31  ;;  %v1530_v8 = vadd.f32 %v2493_v5, %v1369_v2 }
 0x17f   : > { %v2178_v14 = vpack.c.bf16 %v1639_v35, %v1638_v40  ;;  %v2428_v54 = vpop.f32.mrf.mxu1  ;;  %v1521_v61 = vpop.f32.mrf.mxu0  ;;  %v1372_v6 = vadd.f32 %v2426_v27, %v1211_v39  ;;  %v1227_v2 = vadd.f32 %v3313_v60, %v2995_v38 }
 0x180   : > { %v1637_v42 = vsel %vm1573_vm8, %v1509_v31, %v1605_v3  ;;  %v1610_v12 = vmul.f32 0.2, %v1530_v8  ;;  %v1522_v52 = vadd.f32 %v1521_v61, %v1361_v1  ;;  %vm1578_vm9 = vcmp.ge.f32.partialorder %v1530_v8, 0.0 }
 0x181   : > { %2210 = vst [vmem:[%s3137_s29 + $0x58] sm:$0xff] %v2178_v14   ;;  %v2173_v0 = vpack.c.bf16 %v1637_v42, %v1636_v47  ;;  %v2430_v28 = vpop.f32.mrf.mxu1  ;;  %v2494_v59 = vpop.f32.mrf.mxu0  ;;  %v2429_v56 = vadd.f32 %v2428_v54, %v2427_v55 }
 0x182   : > { %v1533_v30 = vadd.f32 %v2494_v59, %v1372_v6  ;;  %v1608_v4 = vmul.f32 0.2, %v1522_v52  ;;  %v1642_v50 = vsel %vm1578_vm9, %v1530_v8, %v1610_v12  ;;  %vm1576_vm11 = vcmp.ge.f32.partialorder %v1522_v52, 0.0 }
 0x183   : > { %2209 = vst [vmem:[%s3137_s29 + $0x50] sm:$0xff] %v2173_v0   ;;  %v2431_v45 = vpop.f32.mrf.mxu1  ;;  %v1524_v44 = vpop.f32.mrf.mxu0  ;;  %v1377_v46 = vadd.f32 %v2429_v56, %v1216_v57 }
 0x184   : > { %vm1579_vm10 = vcmp.ge.f32.partialorder %v1533_v30, 0.0  ;;  %v1611_v20 = vmul.f32 0.2, %v1533_v30  ;;  %v1525_v11 = vadd.f32 %v1524_v44, %v1364_v18  ;;  %v2432_v7 = vadd.f32 %v2431_v45, %v2430_v28 }
 0x185   : > { %v2433_v58 = vpop.f32.mrf.mxu1  ;;  %v2497_v19 = vpop.f32.mrf.mxu0  ;;  %v1640_v63 = vsel %vm1576_vm11, %v1522_v52, %v1608_v4 }
 0x186   : > { %v1643_v21 = vsel %vm1579_vm10, %v1533_v30, %v1611_v20  ;;  %vm1577_vm12 = vcmp.ge.f32.partialorder %v1525_v11, 0.0  ;;  %v1609_v9 = vmul.f32 0.2, %v1525_v11  ;;  %v1380_v34 = vadd.f32 %v2432_v7, %v1219_v24 }
 0x187   : > { %v2188_v32 = vpack.c.bf16 %v1643_v21, %v1642_v50  ;;  %v2434_v48 = vpop.f32.mrf.mxu1  ;;  %v1537_v36 = vpop.f32.mrf.mxu0 }
 0x188   : > { %v1641_v23 = vsel %vm1577_vm12, %v1525_v11, %v1609_v9  ;;  %v2435_v16 = vadd.f32 %v2434_v48, %v2433_v58  ;;  %v1538_v15 = vadd.f32 %v1537_v36, %v1377_v46 }
 0x189   : > { %2212 = vst [vmem:[%s3137_s29 + $0x68] sm:$0xff] %v2188_v32   ;;  %v2183_v49 = vpack.c.bf16 %v1641_v23, %v1640_v63  ;;  %v2436_v53 = vpop.f32.mrf.mxu1  ;;  %v2498_v33 = vpop.f32.mrf.mxu0 }
 0x18a   : > { %v1385_v62 = vadd.f32 %v2435_v16, %v1224_v10  ;;  %v1612_v22 = vmul.f32 0.2, %v1538_v15  ;;  %vm1580_vm13 = vcmp.ge.f32.partialorder %v1538_v15, 0.0 }
 0x18b   : > { %2211 = vst [vmem:[%s3137_s29 + $0x60] sm:$0xff] %v2183_v49   ;;  %v2437_v51 = vpop.f32.mrf.mxu1  ;;  %v1540_v17 = vpop.f32.mrf.mxu0 }
 0x18c   : > { %v1546_v25 = vadd.f32 %v2497_v19, %v1385_v62  ;;  %v2438_v27 = vadd.f32 %v2437_v51, %v2436_v53  ;;  %v1541_v31 = vadd.f32 %v1540_v17, %v1380_v34  ;;  %v1644_v5 = vsel %vm1580_vm13, %v1538_v15, %v1612_v22 }
 0x18e   : > { %v1388_v39 = vadd.f32 %v2438_v27, %v1227_v2  ;;  %vm1581_vm14 = vcmp.ge.f32.partialorder %v1541_v31, 0.0  ;;  %v1613_v37 = vmul.f32 0.2, %v1541_v31  ;;  %v1614_v40 = vmul.f32 0.2, %v1546_v25 }
 0x18f   : > { %vm1582_vm15 = vcmp.ge.f32.partialorder %v1546_v25, 0.0 }
 0x190   : > { %v1549_v55 = vadd.f32 %v2498_v33, %v1388_v39  ;;  %v1645_v35 = vsel %vm1581_vm14, %v1541_v31, %v1613_v37  ;;  %v1646_v14 = vsel %vm1582_vm15, %v1546_v25, %v1614_v40 }
 0x191   : > { %v2193_v8 = vpack.c.bf16 %v1645_v35, %v1644_v5 }
 0x192   : > { %vm1583_vm0 = vcmp.ge.f32.partialorder %v1549_v55, 0.0  ;;  %v1615_v3 = vmul.f32 0.2, %v1549_v55 }
 0x193   : > { %2213 = vst [vmem:[%s3137_s29 + $0x70] sm:$0xff] %v2193_v8  }
 0x194   : > { %v1647_v38 = vsel %vm1583_vm0, %v1549_v55, %v1615_v3 }
 0x195   : > { %v2198_v54 = vpack.c.bf16 %v1647_v38, %v1646_v14 }
 0x197   : > { %2214 = vst [vmem:[%s3137_s29 + $0x78] sm:$0xff] %v2198_v54  }
 0x198 PF: > { %s13_s14 = sadd.s32 1, %s2710_s14   ;;  %s3314_s12 = smov %s2706_s13 }
 0x199   : > { %p10_p5 = scmp.ge.s32.totalorder %s13_s14, 4   ;;  %s3315_s13 = smov %s3317_s15 }
 0x19b   :  { %12 = sbr.rel (!%p10_p5) target bundleno = 2 (0x2), region = 68 }

// kernel: inception_reduction_a.7
= control target key start
LH: loop header
LB: loop body
LE: loop exit
PB: predicated region body
PF: predicated region fallthrough
CT: control target
= control target key end

     0   :  { %s1660_s12 = smov 0   ;;  %s1662_s13 = smov 0   ;;  %s1949_s0 = inlined_call_operand.vmem [shape: bf16[128,864], index: 0, kind: input, shape index: {}]   ;;  %s1950_s1 = inlined_call_operand.vmem [shape: bf16[864,128], index: 1, kind: input, shape index: {}]   ;;  %s1951_s2 = inlined_call_operand.vmem [shape: f32[1,128], index: 2, kind: input, shape index: {}]   ;;  %s1952_s3 = inlined_call_operand.vmem [shape: f32[128,128], index: 3, kind: output, shape index: {}]  }
   0x1   :  { %s1664_s14 = smov 0  }
   0x2 LB: > { %s25_s15 = sadd.s32 1, %s1634_s13  ;;  %p1253_p0 = scmp.ge.s32.totalorder %s1638_s14, 1  ;;  %s1638_s14 = sphi %s1664_s14, %s13_s14   ;;  %s1634_s13 = sphi %s1662_s13, %s1954_s13   ;;  %s1630_s12 = sphi %s1660_s12, %s1953_s12  }
   0x3   : > { %p27_p1 = scmp.ge.s32.totalorder %s25_s15, 2  ;;  %p170_p2 = scmp.lt.s32.totalorder %s1638_s14, 3 }
   0x5   : > { %s1956_s15 = smov (%p27_p1, %s25_s15), 0  ;;  %p171_p3 = pnand %p1253_p0, %p170_p2 }
   0x6   : > { %s1254_s21 = sshll.u32 (!%p171_p3), %s1630_s12, 3 }
   0x7   : > { %174 = sbr.rel (%p171_p3) target bundleno = 310 (0x136), region = 32  ;;  %p206_p4 = scmp.lt.s32.totalorder (!%p171_p3), %s1254_s21, 15 }
   0xc   : > { %v1522_v0 = vld [vmem:[%s1950_s1 + $0x78] sm:$0xff]   ;;  %v1526_v4 = vld [vmem:[%s1950_s1 + $0x70] sm:$0xff]   ;;  %v1530_v8 = vld [vmem:[%s1950_s1 + $0x68] sm:$0xff]   ;;  %s1958_s21 = smov (!%p206_p4, %s1254_s21), 15  ;;  %vm840_vm0 = vcmask 785408  }
   0xd   : > { %v1523_v1 = vld [vmem:[%s1950_s1 + $0x38] sm:$0xff]   ;;  %1347 = vmatprep.subr.bf16.mxu0 %v1522_v0  ;;  %v1527_v5 = vld [vmem:[%s1950_s1 + $0x30] sm:$0xff]   ;;  %v1531_v9 = vld [vmem:[%s1950_s1 + $0x28] sm:$0xff]   ;;  %s1497_s20 = smul.u32 28, %s1958_s21  ;;  %s1257_s16 = sshll.u32 %s1958_s21, 3 }
   0xe   : > { %v1524_v2 = vld [vmem:[%s1950_s1 + $0xf8] sm:$0xff]   ;;  %1348 = vmatpush3.bf16.msra.mxu0 %v1523_v1  ;;  %v1528_v6 = vld [vmem:[%s1950_s1 + $0xf0] sm:$0xff]   ;;  %v1532_v10 = vld [vmem:[%s1950_s1 + $0xe8] sm:$0xff]   ;;  %s1915_s19 = scalar_lea.vmem %s1952_s3, %s1257_s16 }
   0xf   : > { %v1525_v3 = vld [vmem:[%s1950_s1 + $0xb8] sm:$0xff]   ;;  %1387 = vmatprep.subr.bf16.mxu1 %v1524_v2  ;;  %1349 = vmatprep.subr.bf16.mxu0 %v1526_v4  ;;  %v1529_v7 = vld [vmem:[%s1950_s1 + $0xb0] sm:$0xff]   ;;  %v1533_v11 = vld [vmem:[%s1950_s1 + $0xa8] sm:$0xff]   ;;  %s1774_s4 = scalar_lea.vmem %s1949_s0, %s1497_s20 }
  0x10   : > { %1388 = vmatpush3.bf16.msra.mxu1 %v1525_v3  ;;  %v1534_v12 = vld [vmem:[%s1950_s1 + $0x60] sm:$0xff]   ;;  %v1538_v16 = vld [vmem:[%s1950_s1 + $0x58] sm:$0xff]   ;;  %v1542_v20 = vld [vmem:[%s1950_s1 + $0x50] sm:$0xff]  }
  0x11   : > { %1389 = vmatprep.subr.bf16.mxu1 %v1528_v6  ;;  %v1535_v13 = vld [vmem:[%s1950_s1 + $0x20] sm:$0xff]   ;;  %v1539_v17 = vld [vmem:[%s1950_s1 + $0x18] sm:$0xff]   ;;  %v1543_v21 = vld [vmem:[%s1950_s1 + $0x10] sm:$0xff]  }
  0x12   : > { %1350 = vmatpush3.bf16.msra.mxu0 %v1527_v5  ;;  %v1536_v14 = vld [vmem:[%s1950_s1 + $0xe0] sm:$0xff]   ;;  %v1540_v18 = vld [vmem:[%s1950_s1 + $0xd8] sm:$0xff]   ;;  %v1544_v22 = vld [vmem:[%s1950_s1 + $0xd0] sm:$0xff]  }
  0x13   : > { %1351 = vmatprep.subr.bf16.mxu0 %v1530_v8  ;;  %v1537_v15 = vld [vmem:[%s1950_s1 + $0xa0] sm:$0xff]   ;;  %v1541_v19 = vld [vmem:[%s1950_s1 + $0x98] sm:$0xff]   ;;  %v1545_v23 = vld [vmem:[%s1950_s1 + $0x90] sm:$0xff]  }
  0x14   : > { %1390 = vmatpush3.bf16.msra.mxu1 %v1529_v7  ;;  %v1546_v24 = vld [vmem:[%s1950_s1 + $0x48] sm:$0xff]   ;;  %v1550_v28 = vld [vmem:[%s1950_s1 + $0x40] sm:$0xff]   ;;  %v1557_v34 = vld [vmem:[%s1950_s1 + $0x178] sm:$0xff]  }
  0x15   : > { %1391 = vmatprep.subr.bf16.mxu1 %v1532_v10  ;;  %v1547_v25 = vld [vmem:[%s1950_s1 + $0x8] sm:$0xff]   ;;  %v1551_v29 = vld [vmem:[%s1950_s1] sm:$0xff]   ;;  %v1561_v37 = vld [vmem:[%s1950_s1 + $0x138] sm:$0xff]  }
  0x16   : > { %1352 = vmatpush3.bf16.msra.mxu0 %v1531_v9  ;;  %v1548_v26 = vld [vmem:[%s1950_s1 + $0xc8] sm:$0xff]   ;;  %v1552_v30 = vld [vmem:[%s1950_s1 + $0xc0] sm:$0xff]   ;;  %v1562_v38 = vld [vmem:[%s1950_s1 + $0x170] sm:$0xff]  }
  0x17   : > { %1353 = vmatprep.subr.bf16.mxu0 %v1534_v12  ;;  %v1549_v27 = vld [vmem:[%s1950_s1 + $0x88] sm:$0xff]   ;;  %v1553_v31 = vld [vmem:[%s1774_s4] ss:$28 sps:$4 sm:$0xff]   ;;  %v1563_v39 = vld [vmem:[%s1950_s1 + $0x130] sm:$0xff]  }
  0x18   : > { %1392 = vmatpush3.bf16.msra.mxu1 %v1533_v11  ;;  %v1555_v32 = vld [vmem:[%s1774_s4 + $0x4] ss:$28 sps:$4 sm:$0xff]   ;;  %v1560_v36 = vld [vmem:[%s1774_s4 + $0xc] ss:$28 sps:$4 sm:$0xff]   ;;  %v1564_v40 = vld [vmem:[%s1774_s4 + $0x3c] ss:$28 sps:$4 sm:$0xff]  }
  0x19   : > { %1393 = vmatprep.subr.bf16.mxu1 %v1536_v14  ;;  %v1556_v33 = vld [vmem:[%s1950_s1 + $0x80] sm:$0xff]   ;;  %885 = vmatprep.mubr.bf16.mxu0 %v1555_v32  ;;  %v1566_v41 = vld [vmem:[%s1774_s4 + $0x38] ss:$28 sps:$4 sm:$0xff]   ;;  %v1567_v42 = vld [vmem:[%s1950_s1 + $0x168] sm:$0xff]  }
  0x1a   : > { %1354 = vmatpush3.bf16.msra.mxu0 %v1535_v13  ;;  %v1558_v35 = vld [vmem:[%s1774_s4 + $0x8] ss:$28 sps:$4 sm:$0xff]   ;;  %950 = vmatprep.mubr.bf16.mxu1 %v1560_v36  ;;  %v1571_v45 = vld [vmem:[%s1774_s4 + $0x40] ss:$28 sps:$4 sm:$0xff]   ;;  %v1575_v49 = vld [vmem:[%s1774_s4 + $0x74] ss:$28 sps:$4 sm:$0xff]  }
  0x1b   : > { %1355 = vmatprep.subr.bf16.mxu0 %v1538_v16  ;;  %v1568_v43 = vld [vmem:[%s1774_s4 + $0x44] ss:$28 sps:$4 sm:$0xff]   ;;  %v1570_v44 = vld [vmem:[%s1950_s1 + $0x128] sm:$0xff]   ;;  %v1578_v51 = vld [vmem:[%s1950_s1 + $0x158] sm:$0xff]  }
  0x1c   : > { %1394 = vmatpush3.bf16.msra.mxu1 %v1537_v15  ;;  %v1572_v46 = vld [vmem:[%s1950_s1 + $0x160] sm:$0xff]   ;;  %v1573_v47 = vld [vmem:[%s1950_s1 + $0x1a8] sm:$0xff]   ;;  %v1580_v53 = vld [vmem:[%s1774_s4 + $0x7c] ss:$28 sps:$4 sm:$0xff]  }
  0x1d   : > { %1395 = vmatprep.subr.bf16.mxu1 %v1540_v18  ;;  %v1574_v48 = vld [vmem:[%s1950_s1 + $0x120] sm:$0xff]   ;;  %v1577_v50 = vld [vmem:[%s1774_s4 + $0x70] ss:$28 sps:$4 sm:$0xff]   ;;  %v1582_v54 = vld [vmem:[%s1950_s1 + $0x118] sm:$0xff]  }
  0x1e   : > { %1356 = vmatpush3.bf16.msra.mxu0 %v1539_v17  ;;  %v1579_v52 = vld [vmem:[%s1950_s1 + $0x1a0] sm:$0xff]   ;;  %v1583_v55 = vld [vmem:[%s1774_s4 + $0x78] ss:$28 sps:$4 sm:$0xff]   ;;  %v1587_v59 = vld [vmem:[%s1774_s4 + $0xac] ss:$28 sps:$4 sm:$0xff]  }
  0x1f   : > { %1357 = vmatprep.subr.bf16.mxu0 %v1542_v20  ;;  %v1584_v56 = vld [vmem:[%s1950_s1 + $0x150] sm:$0xff]   ;;  %v1585_v57 = vld [vmem:[%s1950_s1 + $0x198] sm:$0xff]   ;;  %v1589_v60 = vld [vmem:[%s1774_s4 + $0xa8] ss:$28 sps:$4 sm:$0xff]  }
  0x20   : > { %1396 = vmatpush3.bf16.msra.mxu1 %v1541_v19  ;;  %v1586_v58 = vld [vmem:[%s1950_s1 + $0x110] sm:$0xff]   ;;  %v1590_v61 = vld [vmem:[%s1950_s1 + $0x148] sm:$0xff]   ;;  %v1596_v2 = vld [vmem:[%s1950_s1 + $0x140] sm:$0xff]  }
  0x21   : > { %1397 = vmatprep.subr.bf16.mxu1 %v1544_v22  ;;  %v1591_v62 = vld [vmem:[%s1950_s1 + $0x190] sm:$0xff]   ;;  %v1594_v0 = vld [vmem:[%s1950_s1 + $0x108] sm:$0xff]   ;;  %v1598_v4 = vld [vmem:[%s1950_s1 + $0x100] sm:$0xff]  }
  0x22   : > { %1358 = vmatpush3.bf16.msra.mxu0 %v1543_v21  ;;  %v1592_v63 = vld [vmem:[%s1774_s4 + $0xb4] ss:$28 sps:$4 sm:$0xff]   ;;  %v1597_v3 = vld [vmem:[%s1950_s1 + $0x188] sm:$0xff]   ;;  %v1602_v7 = vld [vmem:[%s1950_s1 + $0x180] sm:$0xff]  }
  0x23   : > { %1359 = vmatprep.subr.bf16.mxu0 %v1546_v24  ;;  %v1595_v1 = vld [vmem:[%s1774_s4 + $0xb0] ss:$28 sps:$4 sm:$0xff]   ;;  %v1603_v8 = vld [vmem:[%s1774_s4 + $0x18] ss:$28 sps:$4 sm:$0xff]   ;;  %v1611_v11 = vld [vmem:[%s1774_s4 + $0x88] ss:$28 sps:$4 sm:$0xff]  }
  0x24   : > { %1398 = vmatpush3.bf16.msra.mxu1 %v1545_v23  ;;  %v1599_v5 = vld [vmem:[%s1774_s4 + $0x10] ss:$28 sps:$4 sm:$0xff]   ;;  %v1607_v12 = vld [vmem:[%s1774_s4 + $0x48] ss:$28 sps:$4 sm:$0xff]   ;;  %v1612_v14 = vld [vmem:[%s1774_s4 + $0xc0] ss:$28 sps:$4 sm:$0xff]  }
  0x25   : > { %1399 = vmatprep.subr.bf16.mxu1 %v1548_v26  ;;  %v1601_v6 = vld [vmem:[%s1774_s4 + $0x14] ss:$28 sps:$4 sm:$0xff]   ;;  %v1605_v10 = vld [vmem:[%s1774_s4 + $0x4c] ss:$28 sps:$4 sm:$0xff]   ;;  %v1608_v13 = vld [vmem:[%s1774_s4 + $0x84] ss:$28 sps:$4 sm:$0xff]  }
  0x26   : > { %1360 = vmatpush3.bf16.msra.mxu0 %v1547_v25  ;;  %v1604_v9 = vld [vmem:[%s1774_s4 + $0x50] ss:$28 sps:$4 sm:$0xff]   ;;  %v1610_v15 = vld [vmem:[%s1774_s4 + $0x80] ss:$28 sps:$4 sm:$0xff]   ;;  %v1615_v17 = vld [vmem:[%s1774_s4 + $0xb8] ss:$28 sps:$4 sm:$0xff]  }
  0x27   : > { %1361 = vmatprep.subr.bf16.mxu0 %v1550_v28  ;;  %v1613_v16 = vld [vmem:[%s1774_s4 + $0xbc] ss:$28 sps:$4 sm:$0xff]  }
  0x28   : > { %1400 = vmatpush3.bf16.msra.mxu1 %v1549_v27 }
  0x29   : > { %1401 = vmatprep.subr.bf16.mxu1 %v1552_v30 }
  0x2a   : > { %1362 = vmatpush3.bf16.msra.mxu0 %v1551_v29 }
  0x2b   : > { %1427 = vmatprep.subr.bf16.mxu0 %v1557_v34 }
  0x2c   : > { %1402 = vmatpush3.bf16.msra.mxu1 %v1556_v33 }
  0x2d   : > { %886 = vmatmul.mubr.bf16.vlgmr.msra.gmra.mxu0 %v1553_v31  ;;  %1477 = vmatprep.subr.bf16.mxu1 %v1573_v47 }
  0x2e   : > { %1428 = vmatpush3.bf16.msra.mxu0 %v1561_v37  ;;  %893 = vmatprep.mubr.bf16.mxu0 %v1564_v40 }
  0x2f   : > { %951 = vmatmul.mubr.bf16.vlgmr.msra.gmra.mxu1 %v1558_v35  ;;  %1429 = vmatprep.subr.bf16.mxu0 %v1562_v38 }
  0x30   : > { %958 = vmatprep.mubr.bf16.mxu1 %v1568_v43  ;;  %1478 = vmatpush3.bf16.msra.mxu1 %v1573_v47 }
  0x31   : > { %1479 = vmatprep.subr.bf16.mxu1 %v1579_v52 }
  0x32   : > { %1430 = vmatpush3.bf16.msra.mxu0 %v1563_v39 }
  0x33   : > { %1431 = vmatprep.subr.bf16.mxu0 %v1567_v42 }
  0x34   : > { %1480 = vmatpush3.bf16.msra.mxu1 %v1579_v52 }
  0x35   : > { %894 = vmatmul.mubr.bf16.gmra.mxu0 %v1566_v41  ;;  %1481 = vmatprep.subr.bf16.mxu1 %v1585_v57 }
  0x36   : > { %1432 = vmatpush3.bf16.msra.mxu0 %v1570_v44  ;;  %901 = vmatprep.mubr.bf16.mxu0 %v1575_v49 }
  0x37   : > { %959 = vmatmul.mubr.bf16.gmra.mxu1 %v1571_v45  ;;  %1433 = vmatprep.subr.bf16.mxu0 %v1572_v46 }
  0x38   : > { %966 = vmatprep.mubr.bf16.mxu1 %v1580_v53  ;;  %1482 = vmatpush3.bf16.msra.mxu1 %v1585_v57 }
  0x39   : > { %1483 = vmatprep.subr.bf16.mxu1 %v1591_v62 }
  0x3a   : > { %1434 = vmatpush3.bf16.msra.mxu0 %v1574_v48  ;;  %v1900_v48 = vld [vmem:[%s1951_s2] ss:$0 sm:$0xff] }
  0x3b   : > { %1435 = vmatprep.subr.bf16.mxu0 %v1578_v51 }
  0x3c   : > { %1484 = vmatpush3.bf16.msra.mxu1 %v1591_v62 }
  0x3d   : > { %902 = vmatmul.mubr.bf16.gmra.mxu0 %v1577_v50  ;;  %1485 = vmatprep.subr.bf16.mxu1 %v1597_v3 }
  0x3e   : > { %1436 = vmatpush3.bf16.msra.mxu0 %v1582_v54  ;;  %909 = vmatprep.mubr.bf16.mxu0 %v1587_v59 }
  0x3f   : > { %967 = vmatmul.mubr.bf16.gmra.mxu1 %v1583_v55  ;;  %1437 = vmatprep.subr.bf16.mxu0 %v1584_v56 }
  0x40   : > { %974 = vmatprep.mubr.bf16.mxu1 %v1592_v63  ;;  %1486 = vmatpush3.bf16.msra.mxu1 %v1597_v3 }
  0x41   : > { %1487 = vmatprep.subr.bf16.mxu1 %v1602_v7 }
  0x42   : > { %1438 = vmatpush3.bf16.msra.mxu0 %v1586_v58 }
  0x43   : > { %1439 = vmatprep.subr.bf16.mxu0 %v1590_v61 }
  0x44   : > { %1488 = vmatpush3.bf16.msra.mxu1 %v1602_v7 }
  0x45   : > { %910 = vmatmul.mubr.bf16.gmra.mxu0 %v1589_v60 }
  0x46   : > { %1440 = vmatpush3.bf16.msra.mxu0 %v1594_v0  ;;  %1015 = vmatprep.mubr.bf16.mxu0 %v1601_v6 }
  0x47   : > { %975 = vmatmul.mubr.bf16.gmra.mxu1 %v1595_v1  ;;  %1441 = vmatprep.subr.bf16.mxu0 %v1596_v2 }
  0x48   : > { %1489 = vmatprep.mubr.msk.bf16.mxu1 %vm840_vm0, %v1603_v8 }
  0x4a   : > { %1442 = vmatpush3.bf16.msra.mxu0 %v1598_v4 }
  0x4d   : > { %1016 = vmatmul.mubr.bf16.vlgmr.msra.gmra.mxu0 %v1599_v5 }
  0x4e   : > { %1023 = vmatprep.mubr.bf16.mxu0 %v1605_v10 }
  0x4f   : > { %1490 = vmatmul.mubr.msk.bf16.vlgmr.msra.gmra.mxu1 %vm840_vm0, %v1604_v9 }
  0x50   : > { %1493 = vmatprep.mubr.msk.bf16.mxu1 %vm840_vm0, %v1611_v11 }
  0x55   : > { %1024 = vmatmul.mubr.bf16.gmra.mxu0 %v1607_v12 }
  0x56   : > { %1031 = vmatprep.mubr.bf16.mxu0 %v1608_v13 }
  0x57   : > { %1494 = vmatmul.mubr.msk.bf16.gmra.mxu1 %vm840_vm0, %v1612_v14 }
  0x5d   : > { %1032 = vmatmul.mubr.bf16.gmra.mxu0 %v1610_v15 }
  0x5e   : > { %1039 = vmatprep.mubr.bf16.mxu0 %v1613_v16 }
  0x65   : > { %1040 = vmatmul.mubr.bf16.gmra.mxu0 %v1615_v17 }
  0xed   : > { %v1363_v18 = vpop.f32.mrf.mxu0 }
  0xef   : > { %v1364_v19 = vpop.f32.mrf.mxu0  ;;  %v1403_v20 = vpop.f32.mrf.mxu1 }
  0xf0   : > { %v1365_v46 = vadd.f32 %v1364_v19, %v1363_v18 }
  0xf1   : > { %v1366_v21 = vpop.f32.mrf.mxu0  ;;  %v1404_v22 = vpop.f32.mrf.mxu1 }
  0xf2   : > { %v888_v51 = vadd.f32 %v1365_v46, %v1900_v48  ;;  %v1405_v52 = vadd.f32 %v1404_v22, %v1403_v20 }
  0xf3   : > { %v1367_v23 = vpop.f32.mrf.mxu0  ;;  %v1406_v24 = vpop.f32.mrf.mxu1 }
  0xf4   : > { %v1368_v53 = vadd.f32 %v1367_v23, %v1366_v21  ;;  %v953_v58 = vadd.f32 %v1405_v52, %v888_v51 }
  0xf5   : > { %v1369_v25 = vpop.f32.mrf.mxu0  ;;  %v1407_v26 = vpop.f32.mrf.mxu1 }
  0xf6   : > { %v891_v59 = vadd.f32 %v1368_v53, %v1900_v48  ;;  %v1408_v60 = vadd.f32 %v1407_v26, %v1406_v24 }
  0xf7   : > { %v1370_v27 = vpop.f32.mrf.mxu0  ;;  %v1409_v28 = vpop.f32.mrf.mxu1 }
  0xf8   : > { %v1371_v56 = vadd.f32 %v1370_v27, %v1369_v25  ;;  %v956_v6 = vadd.f32 %v1408_v60, %v891_v59 }
  0xf9   : > { %v1372_v29 = vpop.f32.mrf.mxu0  ;;  %v1410_v30 = vpop.f32.mrf.mxu1 }
  0xfa   : > { %v896_v2 = vadd.f32 %v1371_v56, %v1900_v48  ;;  %v1411_v3 = vadd.f32 %v1410_v30, %v1409_v28 }
  0xfb   : > { %v1373_v31 = vpop.f32.mrf.mxu0  ;;  %v1412_v32 = vpop.f32.mrf.mxu1 }
  0xfc   : > { %v1374_v4 = vadd.f32 %v1373_v31, %v1372_v29  ;;  %v961_v14 = vadd.f32 %v1411_v3, %v896_v2 }
  0xfd   : > { %v1375_v33 = vpop.f32.mrf.mxu0  ;;  %v1413_v34 = vpop.f32.mrf.mxu1 }
  0xfe   : > { %v899_v15 = vadd.f32 %v1374_v4, %v1900_v48  ;;  %v1414_v18 = vadd.f32 %v1413_v34, %v1412_v32 }
  0xff   : > { %v1376_v35 = vpop.f32.mrf.mxu0  ;;  %v1415_v36 = vpop.f32.mrf.mxu1 }
 0x100   : > { %v1377_v16 = vadd.f32 %v1376_v35, %v1375_v33  ;;  %v964_v30 = vadd.f32 %v1414_v18, %v899_v15 }
 0x101   : > { %v1378_v37 = vpop.f32.mrf.mxu0  ;;  %v1416_v38 = vpop.f32.mrf.mxu1 }
 0x102   : > { %v904_v26 = vadd.f32 %v1377_v16, %v1900_v48  ;;  %v1417_v27 = vadd.f32 %v1416_v38, %v1415_v36 }
 0x103   : > { %v1379_v39 = vpop.f32.mrf.mxu0  ;;  %v1883_v40 = vpop.f32.mrf.mxu1 }
 0x104   : > { %v1380_v28 = vadd.f32 %v1379_v39, %v1378_v37  ;;  %v969_v52 = vadd.f32 %v1417_v27, %v904_v26 }
 0x105   : > { %v1885_v41 = vpop.f32.mrf.mxu0  ;;  %v1887_v42 = vpop.f32.mrf.mxu1 }
 0x106   : > { %v907_v53 = vadd.f32 %v1380_v28, %v1900_v48  ;;  %v1420_v37 = vadd.f32 %v1887_v42, %v1883_v40 }
 0x107   : > { %v1889_v43 = vpop.f32.mrf.mxu0  ;;  %v1891_v44 = vpop.f32.mrf.mxu1 }
 0x108   : > { %v972_v40 = vadd.f32 %v1420_v37, %v907_v53 }
 0x109   : > { %v1893_v45 = vpop.f32.mrf.mxu0  ;;  %v1895_v47 = vpop.f32.mrf.mxu1 }
 0x10b   : > { %v1902_v49 = vpop.f32.mrf.mxu0  ;;  %v1904_v50 = vpop.f32.mrf.mxu1 }
 0x10d   : > { %v1443_v54 = vpop.f32.mrf.mxu0  ;;  %v1907_v55 = vpop.f32.mrf.mxu1 }
 0x10f   : > { %v1444_v57 = vpop.f32.mrf.mxu0  ;;  %v1491_v62 = vpop.f32.mrf.mxu1 }
 0x110   : > { %v1445_v61 = vadd.f32 %v1444_v57, %v1443_v54  ;;  %v1383_v54 = vadd.f32 %v1889_v43, %v1885_v41  ;;  %v1386_v41 = vadd.f32 %v1902_v49, %v1893_v45  ;;  %v1426_v45 = vadd.f32 %v1907_v55, %v1904_v50 }
 0x111   : > { %v1446_v63 = vpop.f32.mrf.mxu0  ;;  %v1082_v1 = vpop.f32.mrf.mxu1 }
 0x112   : > { %v1018_v0 = vadd.f32 %v1445_v61, %v953_v58  ;;  %v912_v61 = vadd.f32 %v1383_v54, %v1900_v48 }
 0x113   : > { %v1447_v5 = vpop.f32.mrf.mxu0  ;;  %v1492_v9 = vpop.f32.mrf.mxu1 }
 0x114   : > { %v1448_v7 = vadd.f32 %v1447_v5, %v1446_v63  ;;  %v1083_v8 = vadd.f32 %v1082_v1, %v1018_v0 }
 0x115   : > { %v1449_v10 = vpop.f32.mrf.mxu0  ;;  %v1085_v13 = vpop.f32.mrf.mxu1 }
 0x116   : > { %vm1113_vm1 = vcmp.ge.f32.partialorder %v1083_v8, 0.0  ;;  %v1121_v11 = vmul.f32 0.2, %v1083_v8  ;;  %v1021_v12 = vadd.f32 %v1448_v7, %v956_v6  ;;  %v915_v6 = vadd.f32 %v1386_v41, %v1900_v48 }
 0x117   : > { %v1450_v17 = vpop.f32.mrf.mxu0  ;;  %v1495_v23 = vpop.f32.mrf.mxu1 }
 0x118   : > { %v1129_v19 = vsel %vm1113_vm1, %v1083_v8, %v1121_v11  ;;  %v1451_v20 = vadd.f32 %v1450_v17, %v1449_v10  ;;  %v1086_v21 = vadd.f32 %v1085_v13, %v1021_v12  ;;  %v980_v12 = vadd.f32 %v1426_v45, %v915_v6 }
 0x119   : > { %1137 = vst [vmem:[%s1915_s19] sm:$0xff] %v1129_v19  ;;  %v1452_v22 = vpop.f32.mrf.mxu0  ;;  %v1098_v35 = vpop.f32.mrf.mxu1 }
 0x11a   : > { %v1026_v24 = vadd.f32 %v1451_v20, %v961_v14  ;;  %vm1114_vm2 = vcmp.ge.f32.partialorder %v1086_v21, 0.0  ;;  %v1122_v25 = vmul.f32 0.2, %v1086_v21 }
 0x11b   : > { %v1453_v29 = vpop.f32.mrf.mxu0  ;;  %v1496_v58 = vpop.f32.mrf.mxu1 }
 0x11c   : > { %v1091_v31 = vadd.f32 %v1491_v62, %v1026_v24  ;;  %v1130_v33 = vsel %vm1114_vm2, %v1086_v21, %v1122_v25  ;;  %v1454_v32 = vadd.f32 %v1453_v29, %v1452_v22  ;;  %v1423_v62 = vadd.f32 %v1895_v47, %v1891_v44 }
 0x11d   : > { %1138 = vst [vmem:[%s1915_s19 + $0x8] sm:$0xff] %v1130_v33  ;;  %v1455_v34 = vpop.f32.mrf.mxu0  ;;  %v1101_v2 = vpop.f32.mrf.mxu1 }
 0x11e   : > { %vm1115_vm3 = vcmp.ge.f32.partialorder %v1091_v31, 0.0  ;;  %v1123_v46 = vmul.f32 0.2, %v1091_v31  ;;  %v1029_v51 = vadd.f32 %v1454_v32, %v964_v30  ;;  %v977_v5 = vadd.f32 %v1423_v62, %v912_v61 }
 0x11f   : > { %v1456_v36 = vpop.f32.mrf.mxu0 }
 0x120   : > { %v1131_v38 = vsel %vm1115_vm3, %v1091_v31, %v1123_v46  ;;  %v1094_v39 = vadd.f32 %v1492_v9, %v1029_v51  ;;  %v1457_v56 = vadd.f32 %v1456_v36, %v1455_v34 }
 0x121   : > { %1139 = vst [vmem:[%s1915_s19 + $0x10] sm:$0xff] %v1131_v38  ;;  %v1458_v57 = vpop.f32.mrf.mxu0 }
 0x122   : > { %vm1116_vm4 = vcmp.ge.f32.partialorder %v1094_v39, 0.0  ;;  %v1124_v59 = vmul.f32 0.2, %v1094_v39  ;;  %v1034_v60 = vadd.f32 %v1457_v56, %v969_v52 }
 0x123   : > { %v1459_v43 = vpop.f32.mrf.mxu0 }
 0x124   : > { %v1132_v42 = vsel %vm1116_vm4, %v1094_v39, %v1124_v59  ;;  %v1460_v63 = vadd.f32 %v1459_v43, %v1458_v57  ;;  %v1099_v0 = vadd.f32 %v1098_v35, %v1034_v60 }
 0x125   : > { %1140 = vst [vmem:[%s1915_s19 + $0x18] sm:$0xff] %v1132_v42  ;;  %v1461_v1 = vpop.f32.mrf.mxu0 }
 0x126   : > { %vm1117_vm5 = vcmp.ge.f32.partialorder %v1099_v0, 0.0  ;;  %v1125_v3 = vmul.f32 0.2, %v1099_v0  ;;  %v1037_v4 = vadd.f32 %v1460_v63, %v972_v40 }
 0x127   : > { %v1462_v44 = vpop.f32.mrf.mxu0 }
 0x128   : > { %v1133_v47 = vsel %vm1117_vm5, %v1099_v0, %v1125_v3  ;;  %v1463_v49 = vadd.f32 %v1462_v44, %v1461_v1  ;;  %v1102_v7 = vadd.f32 %v1101_v2, %v1037_v4 }
 0x129   : > { %1141 = vst [vmem:[%s1915_s19 + $0x20] sm:$0xff] %v1133_v47  ;;  %v1464_v8 = vpop.f32.mrf.mxu0 }
 0x12a   : > { %v1042_v9 = vadd.f32 %v1463_v49, %v977_v5  ;;  %vm1118_vm6 = vcmp.ge.f32.partialorder %v1102_v7, 0.0  ;;  %v1126_v10 = vmul.f32 0.2, %v1102_v7 }
 0x12b   : > { %v1465_v11 = vpop.f32.mrf.mxu0 }
 0x12c   : > { %v1107_v13 = vadd.f32 %v1495_v23, %v1042_v9  ;;  %v1134_v14 = vsel %vm1118_vm6, %v1102_v7, %v1126_v10  ;;  %v1466_v48 = vadd.f32 %v1465_v11, %v1464_v8 }
 0x12d   : > { %1142 = vst [vmem:[%s1915_s19 + $0x28] sm:$0xff] %v1134_v14 }
 0x12e   : > { %vm1119_vm7 = vcmp.ge.f32.partialorder %v1107_v13, 0.0  ;;  %v1127_v15 = vmul.f32 0.2, %v1107_v13  ;;  %v1045_v16 = vadd.f32 %v1466_v48, %v980_v12 }
 0x130   : > { %v1135_v50 = vsel %vm1119_vm7, %v1107_v13, %v1127_v15  ;;  %v1110_v55 = vadd.f32 %v1496_v58, %v1045_v16 }
 0x131   : > { %1143 = vst [vmem:[%s1915_s19 + $0x30] sm:$0xff] %v1135_v50 }
 0x132   : > { %vm1120_vm8 = vcmp.ge.f32.partialorder %v1110_v55, 0.0  ;;  %v1128_v17 = vmul.f32 0.2, %v1110_v55 }
 0x134   : > { %v1136_v18 = vsel %vm1120_vm8, %v1110_v55, %v1128_v17 }
 0x135   : > { %1144 = vst [vmem:[%s1915_s19 + $0x38] sm:$0xff] %v1136_v18 }
 0x136 PF: > { %s13_s14 = sadd.s32 1, %s1638_s14   ;;  %s1953_s12 = smov %s1634_s13 }
 0x137   : > { %p10_p5 = scmp.ge.s32.totalorder %s13_s14, 4   ;;  %s1954_s13 = smov %s1956_s15 }
 0x139   :  { %12 = sbr.rel (!%p10_p5) target bundleno = 2 (0x2), region = 68 }

// kernel: inception_reduction_a.4
= control target key start
LH: loop header
LB: loop body
LE: loop exit
PB: predicated region body
PF: predicated region fallthrough
CT: control target
= control target key end

     0   :  { %s846_s12 = smov 0   ;;  %s848_s13 = smov 0   ;;  %s977_s0 = inlined_call_operand.vmem [shape: bf16[128,48], index: 0, kind: input, shape index: {}]   ;;  %s978_s1 = inlined_call_operand.vmem [shape: bf16[48,384], index: 1, kind: input, shape index: {}]   ;;  %s979_s2 = inlined_call_operand.vmem [shape: f32[1,384], index: 2, kind: input, shape index: {}]   ;;  %s980_s3 = inlined_call_operand.vmem [shape: f32[128,384], index: 3, kind: output, shape index: {}]  }
   0x1   :  { %s850_s14 = smov 0  }
   0x2 LB: > { %s25_s15 = sadd.s32 1, %s819_s13  ;;  %p710_p0 = scmp.ge.s32.totalorder %s823_s14, 1  ;;  %s823_s14 = sphi %s850_s14, %s13_s14   ;;  %s819_s13 = sphi %s848_s13, %s982_s13   ;;  %s815_s12 = sphi %s846_s12, %s981_s12  }
   0x3   : > { %p27_p1 = scmp.ge.s32.totalorder %s25_s15, 2  ;;  %p173_p2 = scmp.lt.s32.totalorder %s823_s14, 3 }
   0x5   : > { %s984_s15 = smov (%p27_p1, %s25_s15), 0  ;;  %p174_p3 = pnand %p710_p0, %p173_p2 }
   0x6   : > { %s711_s18 = sshll.u32 (!%p174_p3), %s815_s12, 3 }
   0x7   : > { %177 = sbr.rel (%p174_p3) target bundleno = 254 (0xfe), region = 32  ;;  %p212_p4 = scmp.lt.s32.totalorder (!%p174_p3), %s711_s18, 15 }
   0xc   : > { %v785_v0 = vld [vmem:[%s978_s1 + $0x34] ss:$12 sps:$4 sm:$0xff]   ;;  %v787_v1 = vld [vmem:[%s978_s1 + $0x30] ss:$12 sps:$4 sm:$0xff]   ;;  %v825_v2 = vmov 0   ;;  %s986_s18 = smov (!%p212_p4, %s711_s18), 15  ;;  %v263_v14 = vlaneseq }
   0xd   : > { %391 = vmatprep.mubr.bf16.mxu0 %v825_v2  ;;  %369 = vmatprep.subr.bf16.mxu0 %v785_v0  ;;  %v788_v3 = vld [vmem:[%s978_s1 + $0x1c] ss:$12 sps:$4 sm:$0xff]   ;;  %v790_v4 = vld [vmem:[%s978_s1 + $0x18] ss:$12 sps:$4 sm:$0xff]   ;;  %v794_v7 = vld [vmem:[%s978_s1] ss:$12 sps:$4 sm:$0xff]  }
   0xe   : > { %370 = vmatpush1.bf16.msra.mxu0 %v787_v1  ;;  %v791_v5 = vld [vmem:[%s978_s1 + $0x4] ss:$12 sps:$4 sm:$0xff]   ;;  %s712_s4 = sshll.u32 %s986_s18, 2  ;;  %v796_v8 = vld [vmem:[%s978_s1 + $0x20] ss:$12 sps:$4 sm:$0xff]   ;;  %vm346_vm0 = vcmask 392192  }
   0xf   : > { %371 = vmatprep.subr.bf16.mxu0 %v788_v3  ;;  %v793_v6 = vld [vmem:[%s978_s1 + $0x38] ss:$12 sps:$4 sm:$0xff]   ;;  %s215_s7 = scalar_lea.vmem %s977_s0, %s712_s4  ;;  %v797_v10 = vld [vmem:[%s978_s1 + $0x8] ss:$12 sps:$4 sm:$0xff]   ;;  %v264_v15 = vshrl.u32 %v263_v14, 7  ;;  %s759_s17 = smul.u32 24, %s986_s18 }
  0x10   : > { %745 = vmatprep.subr.bf16.mxu1 %v793_v6  ;;  %v795_v9 = vld [vmem:[%s215_s7] sm:$0xff]   ;;  %v798_v11 = vld [vmem:[%s215_s7 + $0x8] sm:$0xff]   ;;  %v799_v12 = vld [vmem:[%s215_s7 + $0x10] sm:$0xff]  }
  0x11   : > { %746 = vmatpush3.bf16.msra.mxu1 %v793_v6  ;;  %751 = vmatprep.mubr.msk.bf16.mxu1 %vm346_vm0, %v795_v9  ;;  %v800_v13 = vld [vmem:[%s215_s7 + $0x18] sm:$0xff]   ;;  %v265_v16 = vsub.s32 0, %v264_v15  ;;  %v261_v17 = vld [vmem:[%s979_s2] sm:$0x7]  ;;  %v269_v18 = vsub.s32 1, %v264_v15  ;;  %v273_v20 = vsub.s32 2, %v264_v15  ;;  %s919_s21 = scalar_lea.vmem %s980_s3, %s759_s17 }
  0x12   : > { %372 = vmatpush1.bf16.msra.mxu0 %v790_v4  ;;  %747 = vmatprep.subr.bf16.mxu1 %v796_v8 }
  0x13   : > { %373 = vmatprep.subr.bf16.mxu0 %v791_v5  ;;  %v908_v19 = vrot.slane %v261_v17, %v265_v16  ;;  %v911_v21 = vrot.slane %v261_v17, %v269_v18  ;;  %v914_v25 = vrot.slane %v261_v17, %v273_v20 }
  0x15   : > { %748 = vmatpush3.bf16.msra.mxu1 %v796_v8 }
  0x16   : > { %374 = vmatpush1.bf16.msra.mxu0 %v794_v7  ;;  %749 = vmatprep.subr.bf16.mxu1 %v797_v10 }
  0x19   : > { %728 = vmatmul.mubr.msk.bf16.vlgmr.msra.gmra.mxu0 %vm346_vm0, %v795_v9  ;;  %750 = vmatpush3.bf16.msra.mxu1 %v797_v10 }
  0x1a   : > { %401 = vmatprep.mubr.bf16.mxu0 %v825_v2 }
  0x1c   : > { %752 = vmatmul.mubr.msk.bf16.vlgmr.msra.gmra.mxu1 %vm346_vm0, %v798_v11 }
  0x1d   : > { %755 = vmatprep.mubr.msk.bf16.mxu1 %vm346_vm0, %v799_v12 }
  0x21   : > { %729 = vmatmul.mubr.msk.bf16.gmra.mxu0 %vm346_vm0, %v798_v11 }
  0x22   : > { %411 = vmatprep.mubr.bf16.mxu0 %v825_v2 }
  0x24   : > { %756 = vmatmul.mubr.msk.bf16.gmra.mxu1 %vm346_vm0, %v800_v13 }
  0x29   : > { %730 = vmatmul.mubr.msk.bf16.gmra.mxu0 %vm346_vm0, %v799_v12 }
  0x2a   : > { %421 = vmatprep.mubr.bf16.mxu0 %v825_v2 }
  0x31   : > { %731 = vmatmul.mubr.msk.bf16.gmra.mxu0 %vm346_vm0, %v800_v13 }
  0xd9   : > { %v393_v22 = vpop.f32.mrf.mxu0 }
  0xda   : > { %v394_v23 = vadd.f32 %v393_v22, %v908_v19 }
  0xdb   : > { %v395_v24 = vpop.f32.mrf.mxu0 }
  0xdc   : > { %vm497_vm1 = vcmp.ge.f32.partialorder %v394_v23, 0.0  ;;  %v521_v26 = vmul.f32 0.2, %v394_v23  ;;  %v396_v27 = vadd.f32 %v395_v24, %v911_v21  ;;  %v753_v29 = vpop.f32.mrf.mxu1 }
  0xdd   : > { %v397_v28 = vpop.f32.mrf.mxu0  ;;  %v475_v34 = vadd.f32 %v753_v29, %v914_v25 }
  0xde   : > { %v545_v30 = vsel %vm497_vm1, %v394_v23, %v521_v26  ;;  %vm498_vm2 = vcmp.ge.f32.partialorder %v396_v27, 0.0  ;;  %v522_v31 = vmul.f32 0.2, %v396_v27  ;;  %v398_v32 = vadd.f32 %v397_v28, %v908_v19  ;;  %v466_v35 = vpop.f32.mrf.mxu1 }
  0xdf   : > { %569 = vst [vmem:[%s919_s21] sm:$0xff] %v545_v30  ;;  %v399_v33 = vpop.f32.mrf.mxu0  ;;  %vm505_vm4 = vcmp.ge.f32.partialorder %v475_v34, 0.0  ;;  %v529_v40 = vmul.f32 0.2, %v475_v34  ;;  %v467_v41 = vadd.f32 %v466_v35, %v914_v25 }
  0xe0   : > { %v546_v36 = vsel %vm498_vm2, %v396_v27, %v522_v31  ;;  %vm500_vm3 = vcmp.ge.f32.partialorder %v398_v32, 0.0  ;;  %v524_v37 = vmul.f32 0.2, %v398_v32  ;;  %v400_v38 = vadd.f32 %v399_v33, %v911_v21  ;;  %v754_v42 = vpop.f32.mrf.mxu1 }
  0xe1   : > { %570 = vst [vmem:[%s919_s21 + $0x8] sm:$0xff] %v546_v36  ;;  %v403_v39 = vpop.f32.mrf.mxu0  ;;  %v553_v46 = vsel %vm505_vm4, %v475_v34, %v529_v40  ;;  %vm499_vm6 = vcmp.ge.f32.partialorder %v467_v41, 0.0  ;;  %v523_v48 = vmul.f32 0.2, %v467_v41  ;;  %v478_v49 = vadd.f32 %v754_v42, %v914_v25 }
  0xe2   : > { %v548_v43 = vsel %vm500_vm3, %v398_v32, %v524_v37  ;;  %vm501_vm5 = vcmp.ge.f32.partialorder %v400_v38, 0.0  ;;  %v525_v44 = vmul.f32 0.2, %v400_v38  ;;  %v404_v45 = vadd.f32 %v403_v39, %v908_v19  ;;  %v469_v50 = vpop.f32.mrf.mxu1  ;;  %577 = vst [vmem:[%s919_s21 + $0x40] sm:$0xff] %v553_v46 }
  0xe3   : > { %572 = vst [vmem:[%s919_s21 + $0x18] sm:$0xff] %v548_v43  ;;  %v405_v47 = vpop.f32.mrf.mxu0  ;;  %v547_v54 = vsel %vm499_vm6, %v467_v41, %v523_v48  ;;  %vm508_vm8 = vcmp.ge.f32.partialorder %v478_v49, 0.0  ;;  %v532_v56 = vmul.f32 0.2, %v478_v49  ;;  %v470_v57 = vadd.f32 %v469_v50, %v914_v25 }
  0xe4   : > { %v549_v51 = vsel %vm501_vm5, %v400_v38, %v525_v44  ;;  %vm503_vm7 = vcmp.ge.f32.partialorder %v404_v45, 0.0  ;;  %v527_v52 = vmul.f32 0.2, %v404_v45  ;;  %v406_v53 = vadd.f32 %v405_v47, %v911_v21  ;;  %v757_v58 = vpop.f32.mrf.mxu1  ;;  %571 = vst [vmem:[%s919_s21 + $0x10] sm:$0xff] %v547_v54 }
  0xe5   : > { %573 = vst [vmem:[%s919_s21 + $0x20] sm:$0xff] %v549_v51  ;;  %v407_v55 = vpop.f32.mrf.mxu0  ;;  %v556_v62 = vsel %vm508_vm8, %v478_v49, %v532_v56  ;;  %vm502_vm10 = vcmp.ge.f32.partialorder %v470_v57, 0.0  ;;  %v526_v0 = vmul.f32 0.2, %v470_v57  ;;  %v491_v1 = vadd.f32 %v757_v58, %v914_v25 }
  0xe6   : > { %v551_v59 = vsel %vm503_vm7, %v404_v45, %v527_v52  ;;  %vm504_vm9 = vcmp.ge.f32.partialorder %v406_v53, 0.0  ;;  %v528_v60 = vmul.f32 0.2, %v406_v53  ;;  %v408_v61 = vadd.f32 %v407_v55, %v908_v19  ;;  %v482_v2 = vpop.f32.mrf.mxu1  ;;  %580 = vst [vmem:[%s919_s21 + $0x58] sm:$0xff] %v556_v62 }
  0xe7   : > { %575 = vst [vmem:[%s919_s21 + $0x30] sm:$0xff] %v551_v59  ;;  %v409_v63 = vpop.f32.mrf.mxu0  ;;  %v550_v6 = vsel %vm502_vm10, %v470_v57, %v526_v0  ;;  %vm517_vm12 = vcmp.ge.f32.partialorder %v491_v1, 0.0  ;;  %v541_v8 = vmul.f32 0.2, %v491_v1  ;;  %v483_v9 = vadd.f32 %v482_v2, %v914_v25 }
  0xe8   : > { %v552_v3 = vsel %vm504_vm9, %v406_v53, %v528_v60  ;;  %vm506_vm11 = vcmp.ge.f32.partialorder %v408_v61, 0.0  ;;  %v530_v4 = vmul.f32 0.2, %v408_v61  ;;  %v410_v5 = vadd.f32 %v409_v63, %v911_v21  ;;  %v758_v10 = vpop.f32.mrf.mxu1  ;;  %574 = vst [vmem:[%s919_s21 + $0x28] sm:$0xff] %v550_v6 }
  0xe9   : > { %576 = vst [vmem:[%s919_s21 + $0x38] sm:$0xff] %v552_v3  ;;  %v413_v7 = vpop.f32.mrf.mxu0  ;;  %v565_v14 = vsel %vm517_vm12, %v491_v1, %v541_v8  ;;  %vm511_vm14 = vcmp.ge.f32.partialorder %v483_v9, 0.0  ;;  %v535_v16 = vmul.f32 0.2, %v483_v9  ;;  %v494_v17 = vadd.f32 %v758_v10, %v914_v25 }
  0xea   : > { %v554_v11 = vsel %vm506_vm11, %v408_v61, %v530_v4  ;;  %vm507_vm13 = vcmp.ge.f32.partialorder %v410_v5, 0.0  ;;  %v531_v12 = vmul.f32 0.2, %v410_v5  ;;  %v414_v13 = vadd.f32 %v413_v7, %v908_v19  ;;  %v485_v18 = vpop.f32.mrf.mxu1  ;;  %589 = vst [vmem:[%s919_s21 + $0xa0] sm:$0xff] %v565_v14 }
  0xeb   : > { %578 = vst [vmem:[%s919_s21 + $0x48] sm:$0xff] %v554_v11  ;;  %v415_v15 = vpop.f32.mrf.mxu0  ;;  %v559_v24 = vsel %vm511_vm14, %v483_v9, %v535_v16  ;;  %vm520_vm0 = vcmp.ge.f32.partialorder %v494_v17, 0.0  ;;  %v544_v27 = vmul.f32 0.2, %v494_v17  ;;  %v486_v28 = vadd.f32 %v485_v18, %v914_v25 }
  0xec   : > { %v555_v20 = vsel %vm507_vm13, %v410_v5, %v531_v12  ;;  %vm509_vm15 = vcmp.ge.f32.partialorder %v414_v13, 0.0  ;;  %v533_v22 = vmul.f32 0.2, %v414_v13  ;;  %v416_v23 = vadd.f32 %v415_v15, %v911_v21  ;;  %583 = vst [vmem:[%s919_s21 + $0x70] sm:$0xff] %v559_v24 }
  0xed   : > { %579 = vst [vmem:[%s919_s21 + $0x50] sm:$0xff] %v555_v20  ;;  %v417_v26 = vpop.f32.mrf.mxu0  ;;  %v568_v32 = vsel %vm520_vm0, %v494_v17, %v544_v27  ;;  %vm514_vm2 = vcmp.ge.f32.partialorder %v486_v28, 0.0  ;;  %v538_v34 = vmul.f32 0.2, %v486_v28 }
  0xee   : > { %v557_v29 = vsel %vm509_vm15, %v414_v13, %v533_v22  ;;  %vm510_vm1 = vcmp.ge.f32.partialorder %v416_v23, 0.0  ;;  %v534_v30 = vmul.f32 0.2, %v416_v23  ;;  %v418_v31 = vadd.f32 %v417_v26, %v908_v19  ;;  %592 = vst [vmem:[%s919_s21 + $0xb8] sm:$0xff] %v568_v32 }
  0xef   : > { %581 = vst [vmem:[%s919_s21 + $0x60] sm:$0xff] %v557_v29  ;;  %v419_v33 = vpop.f32.mrf.mxu0  ;;  %v562_v37 = vsel %vm514_vm2, %v486_v28, %v538_v34 }
  0xf0   : > { %v558_v35 = vsel %vm510_vm1, %v416_v23, %v534_v30  ;;  %vm512_vm3 = vcmp.ge.f32.partialorder %v418_v31, 0.0  ;;  %v536_v36 = vmul.f32 0.2, %v418_v31  ;;  %v420_v25 = vadd.f32 %v419_v33, %v911_v21  ;;  %586 = vst [vmem:[%s919_s21 + $0x88] sm:$0xff] %v562_v37 }
  0xf1   : > { %582 = vst [vmem:[%s919_s21 + $0x68] sm:$0xff] %v558_v35  ;;  %v423_v38 = vpop.f32.mrf.mxu0 }
  0xf2   : > { %v560_v39 = vsel %vm512_vm3, %v418_v31, %v536_v36  ;;  %vm513_vm4 = vcmp.ge.f32.partialorder %v420_v25, 0.0  ;;  %v537_v40 = vmul.f32 0.2, %v420_v25  ;;  %v424_v41 = vadd.f32 %v423_v38, %v908_v19 }
  0xf3   : > { %584 = vst [vmem:[%s919_s21 + $0x78] sm:$0xff] %v560_v39  ;;  %v425_v42 = vpop.f32.mrf.mxu0 }
  0xf4   : > { %v561_v43 = vsel %vm513_vm4, %v420_v25, %v537_v40  ;;  %vm515_vm5 = vcmp.ge.f32.partialorder %v424_v41, 0.0  ;;  %v539_v44 = vmul.f32 0.2, %v424_v41  ;;  %v426_v45 = vadd.f32 %v425_v42, %v911_v21 }
  0xf5   : > { %585 = vst [vmem:[%s919_s21 + $0x80] sm:$0xff] %v561_v43  ;;  %v427_v46 = vpop.f32.mrf.mxu0 }
  0xf6   : > { %v563_v47 = vsel %vm515_vm5, %v424_v41, %v539_v44  ;;  %vm516_vm6 = vcmp.ge.f32.partialorder %v426_v45, 0.0  ;;  %v540_v48 = vmul.f32 0.2, %v426_v45  ;;  %v428_v49 = vadd.f32 %v427_v46, %v908_v19 }
  0xf7   : > { %587 = vst [vmem:[%s919_s21 + $0x90] sm:$0xff] %v563_v47  ;;  %v429_v50 = vpop.f32.mrf.mxu0 }
  0xf8   : > { %v564_v51 = vsel %vm516_vm6, %v426_v45, %v540_v48  ;;  %vm518_vm7 = vcmp.ge.f32.partialorder %v428_v49, 0.0  ;;  %v542_v52 = vmul.f32 0.2, %v428_v49  ;;  %v430_v53 = vadd.f32 %v429_v50, %v911_v21 }
  0xf9   : > { %588 = vst [vmem:[%s919_s21 + $0x98] sm:$0xff] %v564_v51 }
  0xfa   : > { %v566_v54 = vsel %vm518_vm7, %v428_v49, %v542_v52  ;;  %vm519_vm8 = vcmp.ge.f32.partialorder %v430_v53, 0.0  ;;  %v543_v55 = vmul.f32 0.2, %v430_v53 }
  0xfb   : > { %590 = vst [vmem:[%s919_s21 + $0xa8] sm:$0xff] %v566_v54 }
  0xfc   : > { %v567_v56 = vsel %vm519_vm8, %v430_v53, %v543_v55 }
  0xfd   : > { %591 = vst [vmem:[%s919_s21 + $0xb0] sm:$0xff] %v567_v56 }
  0xfe PF: > { %s13_s14 = sadd.s32 1, %s823_s14   ;;  %s981_s12 = smov %s819_s13 }
  0xff   : > { %p10_p5 = scmp.ge.s32.totalorder %s13_s14, 4   ;;  %s982_s13 = smov %s984_s15 }
 0x101   :  { %12 = sbr.rel (!%p10_p5) target bundleno = 2 (0x2), region = 68 }

</bundles_post_ra>
